<compile_context>
chip_gen: v7x
topology: tpu7x:2x2x1
jax: 0.10.0
libtpu: 0.0.40
codegen_flags: <defaults>
</compile_context>

<pallas_src>
import jax
import jax.numpy as jnp
from jax.experimental import pallas as pl
from jax.experimental.pallas import tpu as pltpu


_LN_EPS = 1e-6


# ----------------------------- in-kernel math ------------------------------

def _gelu(x):
    # tanh-approx GELU: the transcendental lands in the EUP slot.
    c = 0.7978845608028654  # sqrt(2/pi)
    return 0.5 * x * (1.0 + jnp.tanh(c * (x + 0.044715 * x * x * x)))


# ------------------------------- tiling utils ------------------------------

def _pick_row_tile(nrows, row_width, target=512):
    """Largest divisor t of `nrows` with t*row_width <= max(target, row_width)."""
    budget = max(target, row_width)
    best = 1
    for t in range(1, nrows + 1):
        if nrows % t == 0 and t * row_width <= budget:
            best = t
    return best


def _vmem_limit(nbytes):
    # Bounded, explicit VMEM request.  On v7x (64 MiB / TensorCore) shrink row
    # tiles rather than raising this past ~56 MiB.
    return int(min(max(2 * nbytes, 32 * 1024 * 1024), 100 * 1024 * 1024))


# ------------------------- branch conv + LN + GELU --------------------------

def _branch_conv_ln_gelu(x_nhwc, w_taps, gamma, beta, *, offsets, pad):
    """(1x1 or dilated 3x3) conv (bias=False) + LayerNorm(Cout) + GELU.

    x_nhwc : (N, H, W, Cin) float
    w_taps : (ntaps, Cin, Cout) float, tap order matches `offsets`
    returns: (N, H, W, Cout) bfloat16
    """
    N, H, W, Cin = x_nhwc.shape
    ntaps, _, Cout = w_taps.shape
    assert len(offsets) == ntaps

    xp = x_nhwc
    if pad:
        xp = jnp.pad(xp, ((0, 0), (pad, pad), (pad, pad), (0, 0)))
    Hp, Wp = H + 2 * pad, W + 2 * pad

    # bf16 MXU inputs; f32 accumulation inside the kernel.
    xp = xp.astype(jnp.bfloat16)
    wb = w_taps.astype(jnp.bfloat16)
    g2 = gamma.reshape(1, Cout).astype(jnp.float32)
    b2 = beta.reshape(1, Cout).astype(jnp.float32)

    th = _pick_row_tile(H, W)          # bounded row tile (never whole-M)
    rows = th * W

    def kernel(x_ref, w_ref, g_ref, b_ref, o_ref):
        r0 = pl.program_id(1) * th
        acc = jnp.zeros((rows, Cout), jnp.float32)
        # Fused im2col: gather each tap window from the resident padded image.
        for t, (dy, dx) in enumerate(offsets):
            slab = x_ref[0, pl.ds(r0 + dy, th), pl.ds(dx, W), :]   # (th, W, Cin)
            acc = acc + jnp.dot(slab.reshape(rows, Cin), w_ref[t],
                                preferred_element_type=jnp.float32)
        # LayerNorm over the Cout channels of every spatial position.
        mu = jnp.mean(acc, axis=-1, keepdims=True)
        xc = acc - mu
        var = jnp.mean(xc * xc, axis=-1, keepdims=True)
        y = xc * jax.lax.rsqrt(var + _LN_EPS)
        y = y * g_ref[...] + b_ref[...]
        y = _gelu(y)
        o_ref[...] = y.reshape(1, th, W, Cout).astype(o_ref.dtype)

    est = (2 * Hp * Wp * Cin * 2            # resident image (double-buffered)
           + 2 * ntaps * Cin * Cout * 2     # weights
           + 2 * th * W * Cout * 2          # output tile
           + rows * Cout * 4)               # f32 accumulator
    return pl.pallas_call(
        kernel,
        out_shape=jax.ShapeDtypeStruct((N, H, W, Cout), jnp.bfloat16),
        grid_spec=pltpu.PrefetchScalarGridSpec(
            num_scalar_prefetch=0,
            grid=(N, H // th),
            in_specs=[
                pl.BlockSpec((1, Hp, Wp, Cin), lambda n, m: (n, 0, 0, 0)),
                pl.BlockSpec((ntaps, Cin, Cout), lambda n, m: (0, 0, 0)),
                pl.BlockSpec((1, Cout), lambda n, m: (0, 0)),
                pl.BlockSpec((1, Cout), lambda n, m: (0, 0)),
            ],
            out_specs=pl.BlockSpec((1, th, W, Cout), lambda n, m: (n, m, 0, 0)),
        ),
        compiler_params=pltpu.CompilerParams(
            dimension_semantics=("parallel", "parallel"),
            vmem_limit_bytes=_vmem_limit(est)),
    )(xp, wb, g2, b2)


# ---------------- fuse conv (2x2, stride 2) + LN + GELU + dropout ------------

def _fuse_conv_ln_gelu_dropout(branches, w2, gamma, beta, *, droprate, rng):
    """2x2/stride-2 conv over the (virtually concatenated) branch channels +
    grouped LayerNorm(out_channels) + GELU + dropout.

    branches : list of (N, H, W, Cout) bf16 branch activations
    w2       : (2, L, 2*Cout, Ctot) float, layout (dy, branch, dx*Cout+cin, cout)
    returns  : (N, H//2, W//2, Ctot) float32
    """
    L = len(branches)
    N, H, W, Cout = branches[0].shape
    Hh, Wh = H // 2, W // 2
    Ctot = L * Cout
    use_dropout = droprate > 0.0
    inv_keep = 1.0 / (1.0 - droprate) if use_dropout else 1.0

    # Free row-major reshape (no transpose / HBM shuffle):
    #   (N, H, W, C) -> (N, Hh, 2, Wh, 2*C);  dx is folded into the K dim.
    b5 = [b.reshape(N, Hh, 2, Wh, 2 * Cout).astype(jnp.bfloat16) for b in branches]
    w2b = w2.astype(jnp.bfloat16)
    gamma_f = jnp.tile(gamma.reshape(1, Cout), (1, L)).astype(jnp.float32)  # (1, Ctot)
    beta_f = jnp.tile(beta.reshape(1, Cout), (1, L)).astype(jnp.float32)

    # Group-indicator matrices for the grouped LayerNorm statistics (keeps all
    # in-kernel math 2-D matmuls/elementwise; no lane-dim reshapes or slices).
    gid = jnp.arange(Ctot) // Cout
    ind = (gid[:, None] == jnp.arange(L)[None, :]).astype(jnp.float32)      # (Ctot, L)
    indT = jnp.transpose(ind)                                               # (L, Ctot)

    tho = _pick_row_tile(Hh, Wh)
    rows = tho * Wh

    def kernel(*refs):
        b_refs = refs[:L]
        w_ref = refs[L]
        g_ref = refs[L + 1]
        bt_ref = refs[L + 2]
        ind_ref = refs[L + 3]
        indT_ref = refs[L + 4]
        u_ref = refs[L + 5] if use_dropout else None
        o_ref = refs[-1]

        acc = jnp.zeros((rows, Ctot), jnp.float32)
        for l in range(L):
            for dy in range(2):
                slab = b_refs[l][0, :, dy, :, :]              # (tho, Wh, 2*Cout)
                acc = acc + jnp.dot(slab.reshape(rows, 2 * Cout), w_ref[dy, l],
                                    preferred_element_type=jnp.float32)

        # Grouped LayerNorm: per spatial position, each Cout-sized channel
        # group is normalized; gamma/beta shared across groups.
        inv_g = 1.0 / Cout
        indm = ind_ref[...]
        indm_t = indT_ref[...]
        gmean = jnp.dot(acc, indm, preferred_element_type=jnp.float32) * inv_g
        mean_b = jnp.dot(gmean, indm_t, preferred_element_type=jnp.float32)
        xc = acc - mean_b
        gvar = jnp.dot(xc * xc, indm, preferred_element_type=jnp.float32) * inv_g
        rstd = jax.lax.rsqrt(gvar + _LN_EPS)
        rstd_b = jnp.dot(rstd, indm_t, preferred_element_type=jnp.float32)
        y = xc * rstd_b
        y = y * g_ref[...] + bt_ref[...]
        y = _gelu(y)

        if use_dropout:
            u = u_ref[...].reshape(rows, Ctot)
            y = jnp.where(u >= droprate, y * inv_keep, 0.0)

        o_ref[...] = y.reshape(1, tho, Wh, Ctot).astype(o_ref.dtype)

    in_specs = [pl.BlockSpec((1, tho, 2, Wh, 2 * Cout),
                             lambda n, m: (n, m, 0, 0, 0)) for _ in range(L)]
    in_specs += [
        pl.BlockSpec((2, L, 2 * Cout, Ctot), lambda n, m: (0, 0, 0, 0)),
        pl.BlockSpec((1, Ctot), lambda n, m: (0, 0)),
        pl.BlockSpec((1, Ctot), lambda n, m: (0, 0)),
        pl.BlockSpec((Ctot, L), lambda n, m: (0, 0)),
        pl.BlockSpec((L, Ctot), lambda n, m: (0, 0)),
    ]
    args = list(b5) + [w2b, gamma_f, beta_f, ind, indT]
    if use_dropout:
        # TODO(synk): torch F.dropout RNG not reproducible; jax PRNG uniforms.
        u = jax.random.uniform(rng, (N, Hh, Wh, Ctot), jnp.float32)
        in_specs.append(pl.BlockSpec((1, tho, Wh, Ctot), lambda n, m: (n, m, 0, 0)))
        args.append(u)

    est = (2 * L * tho * 2 * Wh * 2 * Cout * 2      # branch input tiles
           + 2 * 2 * L * 2 * Cout * Ctot * 2        # fuse weights
           + 2 * tho * Wh * Ctot * 4                # output tile (f32)
           + (2 * tho * Wh * Ctot * 4 if use_dropout else 0)
           + rows * Ctot * 4)                       # accumulator
    return pl.pallas_call(
        kernel,
        out_shape=jax.ShapeDtypeStruct((N, Hh, Wh, Ctot), jnp.float32),
        grid_spec=pltpu.PrefetchScalarGridSpec(
            num_scalar_prefetch=0,
            grid=(N, Hh // tho),
            in_specs=in_specs,
            out_specs=pl.BlockSpec((1, tho, Wh, Ctot), lambda n, m: (n, m, 0, 0)),
        ),
        compiler_params=pltpu.CompilerParams(
            dimension_semantics=("parallel", "parallel"),
            vmem_limit_bytes=_vmem_limit(est)),
    )(*args)


# ---------------------------------- module ----------------------------------

def init_aspp_params(key, in_channels, atrous_rates, out_channels):
    params = {"branches": [], "out_channels": out_channels}

    def nk():
        nonlocal key
        key, sub = jax.random.split(key)
        return sub

    # branch 0: 1x1 conv -> taps (1, Cin, Cout)
    w0 = jax.random.normal(nk(), (1, in_channels, out_channels),
                           jnp.float32) / (in_channels ** 0.5)
    params["branches"].append(dict(
        rate=0, w=w0,
        gamma=jnp.ones((out_channels,), jnp.float32),
        beta=jnp.zeros((out_channels,), jnp.float32)))

    # dilated 3x3 branches: HWIO (3,3,Cin,Cout) -> (9, Cin, Cout), tap = ky*3+kx
    for r in atrous_rates:
        w = jax.random.normal(nk(), (3, 3, in_channels, out_channels),
                              jnp.float32) / ((9 * in_channels) ** 0.5)
        params["branches"].append(dict(
            rate=int(r), w=w.reshape(9, in_channels, out_channels),
            gamma=jnp.ones((out_channels,), jnp.float32),
            beta=jnp.zeros((out_channels,), jnp.float32)))

    L = len(params["branches"])
    Ctot = L * out_channels
    # fuse: 2x2 stride-2 conv, HWIO (2,2,Ctot,Ctot) reorganized to
    # (dy, branch, dx*Cout + cin, cout) so the kernel folds dx into K.
    wf = jax.random.normal(nk(), (2, 2, Ctot, Ctot),
                           jnp.float32) / ((4 * Ctot) ** 0.5)
    w2 = wf.reshape(2, 2, L, out_channels, Ctot)
    w2 = jnp.transpose(w2, (0, 2, 1, 3, 4)).reshape(2, L, 2 * out_channels, Ctot)
    params["fuse_w2"] = w2
    params["fuse_gamma"] = jnp.ones((out_channels,), jnp.float32)
    params["fuse_beta"] = jnp.zeros((out_channels,), jnp.float32)
    return params


def aspp_forward(x_nchw, params, droprate=0.5, rng=None):
    """ASPP forward: (N, Cin, H, W) NCHW -> (N, L*out_channels, H//2, W//2)."""
    if rng is None:
        rng = jax.random.PRNGKey(1234)
    x = jnp.transpose(x_nchw, (0, 2, 3, 1))                     # NHWC

    branch_outs = []
    for br in params["branches"]:
        d = br["rate"]
        if d == 0:
            offsets, pad = ((0, 0),), 0
        else:
            offsets = tuple((ky * d, kx * d) for ky in range(3) for kx in range(3))
            pad = d
        branch_outs.append(
            _branch_conv_ln_gelu(x, br["w"], br["gamma"], br["beta"],
                                 offsets=offsets, pad=pad))      # bf16 NHWC

    y = _fuse_conv_ln_gelu_dropout(branch_outs, params["fuse_w2"],
                                   params["fuse_gamma"], params["fuse_beta"],
                                   droprate=float(droprate), rng=rng)
    return jnp.transpose(y, (0, 3, 1, 2))                        # NCHW


# ----------------------------------- main ------------------------------------

if __name__ == "__main__":
    key = jax.random.PRNGKey(0)
    k_x, k_p, k_d = jax.random.split(key, 3)

    N, Cin, H, W = 2, 4, 16, 16
    atrous_rates = (2, 4)
    out_channels = 8   # NOTE: production default (384 = 3*128) is lane-dense.

    x = jax.random.normal(k_x, (N, Cin, H, W), jnp.float32)      # NCHW like PyTorch
    params = init_aspp_params(k_p, Cin, atrous_rates, out_channels)

    out = aspp_forward(x, params, droprate=0.5, rng=k_d)
    out = jax.block_until_ready(out)

    expected = (N, (1 + len(atrous_rates)) * out_channels, H // 2, W // 2)
    assert out.shape == expected, (out.shape, expected)
    assert bool(jnp.all(jnp.isfinite(out)))
    print("KERNEL_OK")
</pallas_src>

<mosaic_0001>
module attributes {stable_mosaic.version = 11 : i64} {
  func.func @kernel(%arg0: i32, %arg1: i32, %arg2: memref<1x16x16x4xbf16, #tpu.memory_space<vmem>>, %arg3: memref<1x4x8xbf16, #tpu.memory_space<vmem>>, %arg4: memref<1x8xf32, #tpu.memory_space<vmem>>, %arg5: memref<1x8xf32, #tpu.memory_space<vmem>>, %arg6: memref<1x16x16x8xbf16, #tpu.memory_space<vmem>>) attributes {dimension_semantics = [#tpu.dimension_semantics<parallel>, #tpu.dimension_semantics<parallel>], iteration_bounds = array<i64: 2, 1>, scalar_prefetch = 0 : i64, scratch_operands = 0 : i64, tpu.core_type = #tpu.core_type<tc>, window_params = [{transform_indices = @transform_0, window_bounds = array<i64: 1, 16, 16, 4>}, {pipeline_mode = #tpu.pipeline_mode<synchronous>, transform_indices = @transform_1, window_bounds = array<i64: 1, 4, 8>}, {pipeline_mode = #tpu.pipeline_mode<synchronous>, transform_indices = @transform_2, window_bounds = array<i64: 1, 8>}, {pipeline_mode = #tpu.pipeline_mode<synchronous>, transform_indices = @transform_3, window_bounds = array<i64: 1, 8>}, {transform_indices = @transform_4, window_bounds = array<i64: 1, 16, 16, 8>}]} {
    %c16_i32 = arith.constant 16 : i32
    %0 = arith.muli %arg1, %c16_i32 : i32
    %cst = arith.constant 0.000000e+00 : f32
    %1 = vector.broadcast %cst : f32 to vector<256x8xf32>
    %c0_i32 = arith.constant 0 : i32
    %2 = arith.addi %0, %c0_i32 : i32
    %c0 = arith.constant 0 : index
    %3 = arith.index_cast %2 : i32 to index
    %c0_0 = arith.constant 0 : index
    %c0_1 = arith.constant 0 : index
    %4 = vector.load %arg2[%c0, %3, %c0_0, %c0_1] : memref<1x16x16x4xbf16, #tpu.memory_space<vmem>>, vector<1x16x16x4xbf16>
    %5 = vector.shape_cast %4 : vector<1x16x16x4xbf16> to vector<16x16x4xbf16>
    %6 = vector.shape_cast %5 : vector<16x16x4xbf16> to vector<256x4xbf16>
    %c0_2 = arith.constant 0 : index
    %c0_3 = arith.constant 0 : index
    %c0_4 = arith.constant 0 : index
    %7 = vector.load %arg3[%c0_2, %c0_3, %c0_4] : memref<1x4x8xbf16, #tpu.memory_space<vmem>>, vector<1x4x8xbf16>
    %8 = vector.shape_cast %7 : vector<1x4x8xbf16> to vector<4x8xbf16>
    %cst_5 = arith.constant dense<0.000000e+00> : vector<256x8xf32>
    %9 = tpu.matmul %6, %8, %cst_5 {dimension_numbers = #tpu.dot_dimension_numbers<[1], [0], [0], [1], [0, 0, 1, 1], [], []>} : vector<256x4xbf16>, vector<4x8xbf16>, vector<256x8xf32> -> vector<256x8xf32>
    %10 = arith.addf %1, %9 : vector<256x8xf32>
    %cst_6 = arith.constant dense<0.000000e+00> : vector<256xf32>
    %11 = vector.multi_reduction <add>, %10, %cst_6 [1] : vector<256x8xf32> to vector<256xf32>
    %12 = vector.shape_cast %11 : vector<256xf32> to vector<256x1xf32>
    %cst_7 = arith.constant 8.000000e+00 : f32
    %13 = vector.broadcast %cst_7 : f32 to vector<256x1xf32>
    %14 = arith.divf %12, %13 : vector<256x1xf32>
    %15 = vector.broadcast %14 : vector<256x1xf32> to vector<256x8xf32>
    %16 = arith.subf %10, %15 : vector<256x8xf32>
    %17 = arith.mulf %16, %16 : vector<256x8xf32>
    %cst_8 = arith.constant dense<0.000000e+00> : vector<256xf32>
    %18 = vector.multi_reduction <add>, %17, %cst_8 [1] : vector<256x8xf32> to vector<256xf32>
    %19 = vector.shape_cast %18 : vector<256xf32> to vector<256x1xf32>
    %cst_9 = arith.constant 8.000000e+00 : f32
    %20 = vector.broadcast %cst_9 : f32 to vector<256x1xf32>
    %21 = arith.divf %19, %20 : vector<256x1xf32>
    %cst_10 = arith.constant 9.99999997E-7 : f32
    %22 = vector.broadcast %cst_10 : f32 to vector<256x1xf32>
    %23 = arith.addf %21, %22 : vector<256x1xf32>
    %24 = math.rsqrt %23 : vector<256x1xf32>
    %25 = vector.broadcast %24 : vector<256x1xf32> to vector<256x8xf32>
    %26 = arith.mulf %16, %25 : vector<256x8xf32>
    %c0_11 = arith.constant 0 : index
    %c0_12 = arith.constant 0 : index
    %27 = vector.load %arg4[%c0_11, %c0_12] : memref<1x8xf32, #tpu.memory_space<vmem>>, vector<1x8xf32>
    %28 = vector.broadcast %27 : vector<1x8xf32> to vector<256x8xf32>
    %29 = arith.mulf %26, %28 : vector<256x8xf32>
    %c0_13 = arith.constant 0 : index
    %c0_14 = arith.constant 0 : index
    %30 = vector.load %arg5[%c0_13, %c0_14] : memref<1x8xf32, #tpu.memory_space<vmem>>, vector<1x8xf32>
    %31 = vector.broadcast %30 : vector<1x8xf32> to vector<256x8xf32>
    %32 = arith.addf %29, %31 : vector<256x8xf32>
    %cst_15 = arith.constant 5.000000e-01 : f32
    %33 = vector.broadcast %cst_15 : f32 to vector<256x8xf32>
    %34 = arith.mulf %33, %32 : vector<256x8xf32>
    %cst_16 = arith.constant 4.471500e-02 : f32
    %35 = vector.broadcast %cst_16 : f32 to vector<256x8xf32>
    %36 = arith.mulf %35, %32 : vector<256x8xf32>
    %37 = arith.mulf %36, %32 : vector<256x8xf32>
    %38 = arith.mulf %37, %32 : vector<256x8xf32>
    %39 = arith.addf %32, %38 : vector<256x8xf32>
    %cst_17 = arith.constant 0.797884583 : f32
    %40 = vector.broadcast %cst_17 : f32 to vector<256x8xf32>
    %41 = arith.mulf %40, %39 : vector<256x8xf32>
    %42 = math.tanh %41 : vector<256x8xf32>
    %cst_18 = arith.constant 1.000000e+00 : f32
    %43 = vector.broadcast %cst_18 : f32 to vector<256x8xf32>
    %44 = arith.addf %43, %42 : vector<256x8xf32>
    %45 = arith.mulf %34, %44 : vector<256x8xf32>
    %46 = vector.shape_cast %45 : vector<256x8xf32> to vector<1x16x16x8xf32>
    %47 = arith.truncf %46 : vector<1x16x16x8xf32> to vector<1x16x16x8xbf16>
    %c0_19 = arith.constant 0 : index
    %c0_20 = arith.constant 0 : index
    %c0_21 = arith.constant 0 : index
    %c0_22 = arith.constant 0 : index
    %48 = vector.load %arg6[%c0_19, %c0_20, %c0_21, %c0_22] : memref<1x16x16x8xbf16, #tpu.memory_space<vmem>>, vector<1x16x16x8xbf16>
    tpu.vector_store %arg6[%c0_19, %c0_20, %c0_21, %c0_22], %47 {strides = array<i32>} : memref<1x16x16x8xbf16, #tpu.memory_space<vmem>>, vector<1x16x16x8xbf16>,
    return
  }
  func.func @transform_0(%arg0: i32, %arg1: i32) -> (i32, i32, i32, i32) {
    %c0_i32 = arith.constant 0 : i32
    %c0_i32_0 = arith.constant 0 : i32
    %c0_i32_1 = arith.constant 0 : i32
    %c0_i32_2 = arith.constant 0 : i32
    return %arg0, %c0_i32, %c0_i32_0, %c0_i32_1 : i32, i32, i32, i32
  }
  func.func @transform_1(%arg0: i32, %arg1: i32) -> (i32, i32, i32) {
    %c0_i32 = arith.constant 0 : i32
    %c0_i32_0 = arith.constant 0 : i32
    %c0_i32_1 = arith.constant 0 : i32
    %c0_i32_2 = arith.constant 0 : i32
    return %c0_i32, %c0_i32_0, %c0_i32_1 : i32, i32, i32
  }
  func.func @transform_2(%arg0: i32, %arg1: i32) -> (i32, i32) {
    %c0_i32 = arith.constant 0 : i32
    %c0_i32_0 = arith.constant 0 : i32
    %c0_i32_1 = arith.constant 0 : i32
    return %c0_i32, %c0_i32_0 : i32, i32
  }
  func.func @transform_3(%arg0: i32, %arg1: i32) -> (i32, i32) {
    %c0_i32 = arith.constant 0 : i32
    %c0_i32_0 = arith.constant 0 : i32
    %c0_i32_1 = arith.constant 0 : i32
    return %c0_i32, %c0_i32_0 : i32, i32
  }
  func.func @transform_4(%arg0: i32, %arg1: i32) -> (i32, i32, i32, i32) {
    %c0_i32 = arith.constant 0 : i32
    %c0_i32_0 = arith.constant 0 : i32
    %c0_i32_1 = arith.constant 0 : i32
    return %arg0, %arg1, %c0_i32, %c0_i32_0 : i32, i32, i32, i32
  }
}

</mosaic_0001>

<bundles_post_ra>
// kernel: tpu_custom_call.1
= control target key start
LH: loop header
LB: loop body
LE: loop exit
PB: predicated region body
PF: predicated region fallthrough
CT: control target
= control target key end

     0   :  { %s1974_s15 = smov 0   ;;  %s1976_s16 = smov 0   ;;  %s2708_s0 = inlined_call_operand.vmem [shape: bf16[2,16,16,4], index: 0, kind: input, shape index: {}]   ;;  %s2709_s1 = inlined_call_operand.vmem [shape: bf16[1,4,8], index: 1, kind: input, shape index: {}]   ;;  %s2710_s2 = inlined_call_operand.vmem [shape: f32[1,8], index: 2, kind: input, shape index: {}]   ;;  %s2711_s3 = inlined_call_operand.vmem [shape: f32[1,8], index: 3, kind: input, shape index: {}]   ;;  %s2712_s4 = inlined_call_operand.vmem [shape: bf16[2,16,16,8], index: 4, kind: output, shape index: {}]  }
   0x1   :  { %s1978_s17 = smov 0  }
   0x2 LB: > { %s26_s18 = sadd.s32 1, %s1943_s16  ;;  %p1593_p0 = scmp.ge.s32.totalorder %s1947_s17, 1  ;;  %s1947_s17 = sphi %s1978_s17, %s14_s17   ;;  %s1943_s16 = sphi %s1976_s16, %s2714_s16   ;;  %s1939_s15 = sphi %s1974_s15, %s2713_s15  }
   0x3   : > { %p28_p1 = scmp.ge.s32.totalorder %s26_s18, 2  ;;  %p176_p2 = scmp.lt.s32.totalorder %s1947_s17, 3 }
   0x5   : > { %s2716_s18 = smov (%p28_p1, %s26_s18), 0  ;;  %p177_p3 = pnand %p1593_p0, %p176_p2 }
   0x6   : > { %v260_v0 = vld [vmem:[%s2709_s1] sm:$0x3] (!%p177_p3)  ;;  %vm390_vm0 = vcmask (!%p177_p3), 1041408   ;;  %p207_p4 = scmp.lt.s32.totalorder (!%p177_p3), %s1939_s15, 1  ;;  %vm341_vm1 = vcmask (!%p177_p3), 31744   ;;  %vm555_vm2 = vcmask (!%p177_p3), 64512  }
   0x7   : > { %180 = sbr.rel (%p177_p3) target bundleno = 681 (0x2a9), region = 36  ;;  %1753 = vmatprep.subr.msk.bf16.mxu0 (!%p177_p3), %vm390_vm0, %v260_v0  ;;  %1754 = vmatprep.subr.msk.bf16.mxu1 (!%p177_p3), %vm390_vm0, %v260_v0  ;;  %v392_v1 = vsel (!%p177_p3), %vm390_vm0, %v260_v0, 0  ;;  %vm1467_vm3 = vcmask (!%p177_p3), 60416  }
   0x8   : > { %1718 = vmatpush3.bf16.msra.mxu0 (!%p177_p3), %v392_v1  ;;  %1752 = vmatpush3.bf16.msra.mxu1 (!%p177_p3), %v392_v1 }
   0xe   : > { %s2718_s15 = smov (!%p207_p4, %s1939_s15), 1 }
   0xf   : > { %s1666_s21 = sshll.u32 %s2718_s15, 7 }
  0x10   : > { %s2003_s24 = scalar_lea.vmem %s2708_s0, %s1666_s21  ;;  %s2434_s5 = scalar_lea.vmem %s2712_s4, %s1666_s21 }
  0x11   : > { %v1779_v2 = vld [vmem:[%s2003_s24] sm:$0xff]   ;;  %v1781_v4 = vld [vmem:[%s2003_s24 + $0x8] sm:$0xff]   ;;  %v1783_v6 = vld [vmem:[%s2003_s24 + $0x10] sm:$0xff]  }
  0x12   : > { %v1780_v3 = vld [vmem:[%s2003_s24 + $0x40] sm:$0xff]   ;;  %1719 = vmatprep.mubr.msk.bf16.mxu0 %vm341_vm1, %v1779_v2  ;;  %v1782_v5 = vld [vmem:[%s2003_s24 + $0x48] sm:$0xff]   ;;  %v1785_v7 = vld [vmem:[%s2003_s24 + $0x50] sm:$0xff]  }
  0x13   : > { %1735 = vmatprep.mubr.msk.bf16.mxu1 %vm341_vm1, %v1780_v3  ;;  %1720 = vmatmul.mubr.msk.bf16.vlgmr.msra.gmra.mrb[0].mxu0 %vm341_vm1, %v1781_v4  ;;  %v1784_v8 = vld [vmem:[%s2003_s24 + $0x18] sm:$0xff]   ;;  %v1787_v10 = vld [vmem:[%s2003_s24 + $0x20] sm:$0xff]   ;;  %v1788_v12 = vld [vmem:[%s2003_s24 + $0x28] sm:$0xff]  }
  0x14   : > { %1736 = vmatmul.mubr.msk.bf16.vlgmr.msra.gmra.mrb[0].mxu1 %vm341_vm1, %v1782_v5  ;;  %1723 = vmatprep.mubr.msk.bf16.mxu0 %vm341_vm1, %v1783_v6  ;;  %v1786_v9 = vld [vmem:[%s2003_s24 + $0x58] sm:$0xff]   ;;  %v1789_v11 = vld [vmem:[%s2003_s24 + $0x60] sm:$0xff]   ;;  %v1790_v13 = vld [vmem:[%s2003_s24 + $0x68] sm:$0xff]  }
  0x15   : > { %1739 = vmatprep.mubr.msk.bf16.mxu1 %vm341_vm1, %v1785_v7  ;;  %v1791_v14 = vld [vmem:[%s2003_s24 + $0x30] sm:$0xff]   ;;  %v1792_v16 = vld [vmem:[%s2003_s24 + $0x38] sm:$0xff]  }
  0x16   : > { %v1793_v15 = vld [vmem:[%s2003_s24 + $0x70] sm:$0xff]   ;;  %v1794_v17 = vld [vmem:[%s2003_s24 + $0x78] sm:$0xff]  }
  0x1b   : > { %1724 = vmatmul.mubr.msk.bf16.gmra.mrb[4].mxu0 %vm341_vm1, %v1784_v8 }
  0x1c   : > { %1740 = vmatmul.mubr.msk.bf16.gmra.mrb[4].mxu1 %vm341_vm1, %v1786_v9  ;;  %1727 = vmatprep.mubr.msk.bf16.mxu0 %vm341_vm1, %v1787_v10 }
  0x1d   : > { %1743 = vmatprep.mubr.msk.bf16.mxu1 %vm341_vm1, %v1789_v11 }
  0x23   : > { %1728 = vmatmul.mubr.msk.bf16.gmra.mrb[8].mxu0 %vm341_vm1, %v1788_v12 }
  0x24   : > { %1744 = vmatmul.mubr.msk.bf16.gmra.mrb[8].mxu1 %vm341_vm1, %v1790_v13  ;;  %1731 = vmatprep.mubr.msk.bf16.mxu0 %vm341_vm1, %v1791_v14 }
  0x25   : > { %1747 = vmatprep.mubr.msk.bf16.mxu1 %vm341_vm1, %v1793_v15 }
  0x2b   : > { %1732 = vmatmul.mubr.msk.bf16.gmra.mrb[12].mxu0 %vm341_vm1, %v1792_v16 }
  0x2c   : > { %1748 = vmatmul.mubr.msk.bf16.gmra.mrb[12].mxu1 %vm341_vm1, %v1794_v17 }
  0xe6   : > { %v2037_v18 = vpop.f32.mrb[0].mxu0 }
  0xe7   : > { %v2039_v19 = vpop.f32.mrb[0].mxu1  ;;  %v2041_v20 = vpop.f32.mrb[1].mxu0  ;;  %v562_v21 = vsel %vm555_vm2, %v2037_v18, 0.0 }
  0xe8   : > { %v2045_v22 = vpop.f32.mrb[1].mxu1  ;;  %v610_v23 = vsel %vm555_vm2, %v2039_v19, 0.0  ;;  %563 = vadd.xlane.f32.xlu1 %v562_v21  ;;  %v2049_v24 = vpop.f32.mrb[2].mxu0  ;;  %v556_v29 = vsel %vm555_vm2, %v2041_v20, 0.0 }
  0xe9   : > { %611 = vadd.xlane.f32.xlu0 %v610_v23  ;;  %v2051_v25 = vpop.f32.mrb[2].mxu1  ;;  %v2053_v26 = vpop.f32.mrb[3].mxu0  ;;  %v565_v28 = vsel %vm555_vm2, %v2049_v24, 0.0  ;;  %v604_v34 = vsel %vm555_vm2, %v2045_v22, 0.0 }
  0xea   : > { %v2055_v27 = vpop.f32.mrb[3].mxu1  ;;  %v613_v31 = vsel %vm555_vm2, %v2051_v25, 0.0  ;;  %v559_v41 = vsel %vm555_vm2, %v2053_v26, 0.0 }
  0xeb   : > { %v607_v40 = vsel %vm555_vm2, %v2055_v27, 0.0 }
  0xec   : > { %566 = vadd.xlane.f32.xlu1 %v565_v28 }
  0xed   : > { %557 = vadd.xlane.f32.xlu0 %v556_v29 }
  0xee   : > { %v2061_v30 = vpop.f32.mrb[4].mxu0 }
  0xef   : > { %v2065_v32 = vpop.f32.mrb[5].mxu0  ;;  %v2067_v33 = vpop.f32.mrb[4].mxu1  ;;  %v574_v43 = vsel %vm555_vm2, %v2061_v30, 0.0 }
  0xf0   : > { %614 = vadd.xlane.f32.xlu1 %v613_v31  ;;  %v2071_v35 = vpop.f32.mrb[6].mxu0  ;;  %v2073_v36 = vpop.f32.mrb[5].mxu1  ;;  %v622_v52 = vsel %vm555_vm2, %v2067_v33, 0.0  ;;  %v568_v58 = vsel %vm555_vm2, %v2065_v32, 0.0 }
  0xf1   : > { %605 = vadd.xlane.f32.xlu0 %v604_v34  ;;  %v2075_v37 = vpop.f32.mrb[7].mxu0  ;;  %v2077_v38 = vpop.f32.mrb[6].mxu1  ;;  %v577_v42 = vsel %vm555_vm2, %v2071_v35, 0.0  ;;  %v616_v1 = vsel %vm555_vm2, %v2073_v36, 0.0 }
  0xf2   : > { %v2079_v39 = vpop.f32.mrb[7].mxu1  ;;  %v625_v49 = vsel %vm555_vm2, %v2077_v38, 0.0  ;;  %v571_v55 = vsel %vm555_vm2, %v2075_v37, 0.0 }
  0xf3   : > { %v619_v0 = vsel %vm555_vm2, %v2079_v39, 0.0 }
  0xf4   : > { %608 = vadd.xlane.f32.xlu1 %v607_v40 }
  0xf5   : > { %560 = vadd.xlane.f32.xlu0 %v559_v41 }
  0xf6   : > { %v2089_v44 = vpop.f32.mrb[8].mxu0 }
  0xf7   : > { %v2091_v45 = vpop.f32.mrb[9].mxu0  ;;  %v2093_v46 = vpop.f32.mrb[8].mxu1  ;;  %v586_v3 = vsel %vm555_vm2, %v2089_v44, 0.0 }
  0xf8   : > { %578 = vadd.xlane.f32.xlu1 %v577_v42  ;;  %v2095_v47 = vpop.f32.mrb[10].mxu0  ;;  %v2097_v48 = vpop.f32.mrb[9].mxu1  ;;  %v634_v5 = vsel %vm555_vm2, %v2093_v46, 0.0  ;;  %v580_v7 = vsel %vm555_vm2, %v2091_v45, 0.0 }
  0xf9   : > { %575 = vadd.xlane.f32.xlu0 %v574_v43  ;;  %v2101_v50 = vpop.f32.mrb[11].mxu0  ;;  %v2103_v51 = vpop.f32.mrb[10].mxu1  ;;  %v589_v2 = vsel %vm555_vm2, %v2095_v47, 0.0  ;;  %v628_v9 = vsel %vm555_vm2, %v2097_v48, 0.0 }
  0xfa   : > { %v2107_v53 = vpop.f32.mrb[11].mxu1  ;;  %v637_v4 = vsel %vm555_vm2, %v2103_v51, 0.0  ;;  %v583_v6 = vsel %vm555_vm2, %v2101_v50, 0.0 }
  0xfb   : > { %v631_v8 = vsel %vm555_vm2, %v2107_v53, 0.0 }
  0xfc   : > { %626 = vadd.xlane.f32.xlu1 %v625_v49 }
  0xfd   : > { %623 = vadd.xlane.f32.xlu0 %v622_v52 }
  0xfe   : > { %v2109_v54 = vpop.f32.mrb[12].mxu0 }
  0xff   : > { %v2113_v56 = vpop.f32.mrb[13].mxu0  ;;  %v2115_v57 = vpop.f32.mrb[12].mxu1  ;;  %v598_v11 = vsel %vm555_vm2, %v2109_v54, 0.0 }
 0x100   : > { %572 = vadd.xlane.f32.xlu1 %v571_v55  ;;  %v2119_v59 = vpop.f32.mrb[14].mxu0  ;;  %v2121_v60 = vpop.f32.mrb[13].mxu1  ;;  %v592_v13 = vsel %vm555_vm2, %v2113_v56, 0.0  ;;  %v646_v17 = vsel %vm555_vm2, %v2115_v57, 0.0 }
 0x101   : > { %569 = vadd.xlane.f32.xlu0 %v568_v58  ;;  %v2123_v61 = vpop.f32.mrb[15].mxu0  ;;  %v2125_v62 = vpop.f32.mrb[14].mxu1  ;;  %v601_v10 = vsel %vm555_vm2, %v2119_v59, 0.0  ;;  %v640_v15 = vsel %vm555_vm2, %v2121_v60, 0.0 }
 0x102   : > { %v2127_v63 = vpop.f32.mrb[15].mxu1  ;;  %v595_v12 = vsel %vm555_vm2, %v2123_v61, 0.0  ;;  %v649_v16 = vsel %vm555_vm2, %v2125_v62, 0.0 }
 0x103   : > { %v643_v14 = vsel %vm555_vm2, %v2127_v63, 0.0 }
 0x104   : > { %620 = vadd.xlane.f32.xlu1 %v619_v0 }
 0x105   : > { %617 = vadd.xlane.f32.xlu0 %v616_v1 }
 0x108   : > { %590 = vadd.xlane.f32.xlu1 %v589_v2 }
 0x109   : > { %587 = vadd.xlane.f32.xlu0 %v586_v3 }
 0x10c   : > { %638 = vadd.xlane.f32.xlu1 %v637_v4 }
 0x10d   : > { %635 = vadd.xlane.f32.xlu0 %v634_v5 }
 0x110   : > { %584 = vadd.xlane.f32.xlu1 %v583_v6 }
 0x111   : > { %581 = vadd.xlane.f32.xlu0 %v580_v7 }
 0x114   : > { %632 = vadd.xlane.f32.xlu1 %v631_v8 }
 0x115   : > { %629 = vadd.xlane.f32.xlu0 %v628_v9 }
 0x118   : > { %602 = vadd.xlane.f32.xlu1 %v601_v10 }
 0x119   : > { %599 = vadd.xlane.f32.xlu0 %v598_v11 }
 0x11c   : > { %596 = vadd.xlane.f32.xlu1 %v595_v12 }
 0x11d   : > { %593 = vadd.xlane.f32.xlu0 %v592_v13 }
 0x120   : > { %644 = vadd.xlane.f32.xlu1 %v643_v14 }
 0x121   : > { %641 = vadd.xlane.f32.xlu0 %v640_v15 }
 0x124   : > { %650 = vadd.xlane.f32.xlu1 %v649_v16 }
 0x125   : > { %647 = vadd.xlane.f32.xlu0 %v646_v17 }
 0x175   : > { %v564_v21 = vpop.xlane.xlu1 %563 }
 0x176   : > { %v612_v23 = vpop.xlane.xlu0 %611  ;;  %v655_v28 = vmul.f32 0.125, %v564_v21 }
 0x177   : > { %v671_v29 = vmul.f32 0.125, %v612_v23 }
 0x178   : > { %v2166_v31 = vsub.f32 %v2037_v18, %v655_v28 }
 0x179   : > { %v2169_v34 = vsub.f32 %v2039_v19, %v671_v29  ;;  %v567_v40 = vpop.xlane.xlu1 %566 }
 0x17a   : > { %v558_v41 = vpop.xlane.xlu0 %557  ;;  %v656_v42 = vmul.f32 0.125, %v567_v40  ;;  %v719_v43 = vmul.f32 %v2166_v31, %v2166_v31 }
 0x17b   : > { %v653_v49 = vmul.f32 0.125, %v558_v41  ;;  %v735_v58 = vmul.f32 %v2169_v34, %v2169_v34 }
 0x17c   : > { %v2174_v52 = vsub.f32 %v2049_v24, %v656_v42  ;;  %v755_v55 = vsel %vm555_vm2, %v719_v43, 0.0 }
 0x17d   : > { %v2180_v18 = vsub.f32 %v2041_v20, %v653_v49  ;;  %v615_v19 = vpop.xlane.xlu1 %614  ;;  %756 = vadd.xlane.f32.xlu0 %v755_v55  ;;  %v803_v24 = vsel %vm555_vm2, %v735_v58, 0.0 }
 0x17e   : > { %v606_v0 = vpop.xlane.xlu0 %605  ;;  %v672_v1 = vmul.f32 0.125, %v615_v19  ;;  %v720_v2 = vmul.f32 %v2174_v52, %v2174_v52 }
 0x17f   : > { %v669_v3 = vmul.f32 0.125, %v606_v0  ;;  %v717_v6 = vmul.f32 %v2180_v18, %v2180_v18 }
 0x180   : > { %v2185_v4 = vsub.f32 %v2051_v25, %v672_v1  ;;  %v758_v5 = vsel %vm555_vm2, %v720_v2, 0.0 }
 0x181   : > { %v2192_v20 = vsub.f32 %v2045_v22, %v669_v3  ;;  %v609_v7 = vpop.xlane.xlu1 %608  ;;  %804 = vadd.xlane.f32.xlu0 %v803_v24  ;;  %759 = vadd.xlane.f32.xlu1 %v758_v5  ;;  %v749_v11 = vsel %vm555_vm2, %v717_v6, 0.0 }
 0x182   : > { %v670_v8 = vmul.f32 0.125, %v609_v7  ;;  %v561_v9 = vpop.xlane.xlu0 %560  ;;  %v736_v10 = vmul.f32 %v2185_v4, %v2185_v4 }
 0x183   : > { %v654_v25 = vmul.f32 0.125, %v561_v9  ;;  %v733_v13 = vmul.f32 %v2192_v20, %v2192_v20 }
 0x184   : > { %v806_v12 = vsel %vm555_vm2, %v736_v10, 0.0  ;;  %v2201_v14 = vsub.f32 %v2055_v27, %v670_v8 }
 0x185   : > { %v2204_v22 = vsub.f32 %v2053_v26, %v654_v25  ;;  %v579_v15 = vpop.xlane.xlu1 %578  ;;  %750 = vadd.xlane.f32.xlu0 %v749_v11  ;;  %807 = vadd.xlane.f32.xlu1 %v806_v12  ;;  %v797_v29 = vsel %vm555_vm2, %v733_v13, 0.0 }
 0x186   : > { %v576_v16 = vpop.xlane.xlu0 %575  ;;  %v660_v17 = vmul.f32 0.125, %v579_v15  ;;  %v734_v41 = vmul.f32 %v2201_v14, %v2201_v14 }
 0x187   : > { %v659_v21 = vmul.f32 0.125, %v576_v16  ;;  %v718_v23 = vmul.f32 %v2204_v22, %v2204_v22 }
 0x188   : > { %v2209_v28 = vsub.f32 %v2071_v35, %v660_v17  ;;  %v800_v1 = vsel %vm555_vm2, %v734_v41, 0.0 }
 0x189   : > { %v2213_v27 = vsub.f32 %v2061_v30, %v659_v21  ;;  %v627_v40 = vpop.xlane.xlu1 %626  ;;  %798 = vadd.xlane.f32.xlu0 %v797_v29  ;;  %v752_v26 = vsel %vm555_vm2, %v718_v23, 0.0 }
 0x18a   : > { %v624_v42 = vpop.xlane.xlu0 %623  ;;  %v676_v43 = vmul.f32 0.125, %v627_v40  ;;  %753 = vadd.xlane.f32.xlu1 %v752_v26  ;;  %v724_v55 = vmul.f32 %v2209_v28, %v2209_v28 }
 0x18b   : > { %v675_v49 = vmul.f32 0.125, %v624_v42  ;;  %v723_v35 = vmul.f32 %v2213_v27, %v2213_v27 }
 0x18c   : > { %v2226_v58 = vsub.f32 %v2077_v38, %v676_v43  ;;  %v770_v6 = vsel %vm555_vm2, %v724_v55, 0.0 }
 0x18d   : > { %v2223_v30 = vsub.f32 %v2067_v33, %v675_v49  ;;  %v573_v19 = vpop.xlane.xlu1 %572  ;;  %v767_v0 = vsel %vm555_vm2, %v723_v35, 0.0 }
 0x18e   : > { %v570_v2 = vpop.xlane.xlu0 %569  ;;  %v658_v3 = vmul.f32 0.125, %v573_v19  ;;  %768 = vadd.xlane.f32.xlu0 %v767_v0  ;;  %801 = vadd.xlane.f32.xlu1 %v800_v1  ;;  %v740_v9 = vmul.f32 %v2226_v58, %v2226_v58 }
 0x18f   : > { %v657_v24 = vmul.f32 0.125, %v570_v2  ;;  %v739_v5 = vmul.f32 %v2223_v30, %v2223_v30 }
 0x190   : > { %v2237_v38 = vsub.f32 %v2075_v37, %v658_v3  ;;  %v818_v16 = vsel %vm555_vm2, %v740_v9, 0.0 }
 0x191   : > { %v2234_v33 = vsub.f32 %v2065_v32, %v657_v24  ;;  %v621_v7 = vpop.xlane.xlu1 %620  ;;  %v815_v8 = vsel %vm555_vm2, %v739_v5, 0.0 }
 0x192   : > { %v618_v10 = vpop.xlane.xlu0 %617  ;;  %v674_v25 = vmul.f32 0.125, %v621_v7  ;;  %816 = vadd.xlane.f32.xlu0 %v815_v8  ;;  %771 = vadd.xlane.f32.xlu1 %v770_v6  ;;  %v722_v17 = vmul.f32 %v2237_v38, %v2237_v38 }
 0x193   : > { %v673_v11 = vmul.f32 0.125, %v618_v10  ;;  %v721_v12 = vmul.f32 %v2234_v33, %v2234_v33 }
 0x194   : > { %v2245_v32 = vsub.f32 %v2079_v39, %v674_v25  ;;  %v764_v43 = vsel %vm555_vm2, %v722_v17, 0.0 }
 0x195   : > { %v2248_v37 = vsub.f32 %v2073_v36, %v673_v11  ;;  %v591_v13 = vpop.xlane.xlu1 %590  ;;  %v761_v15 = vsel %vm555_vm2, %v721_v12, 0.0 }
 0x196   : > { %v588_v21 = vpop.xlane.xlu0 %587  ;;  %v664_v23 = vmul.f32 0.125, %v591_v13  ;;  %762 = vadd.xlane.f32.xlu0 %v761_v15  ;;  %819 = vadd.xlane.f32.xlu1 %v818_v16  ;;  %v738_v36 = vmul.f32 %v2245_v32, %v2245_v32 }
 0x197   : > { %v663_v29 = vmul.f32 0.125, %v588_v21  ;;  %v737_v39 = vmul.f32 %v2248_v37, %v2248_v37 }
 0x198   : > { %v2262_v26 = vsub.f32 %v2095_v47, %v664_v23  ;;  %v812_v0 = vsel %vm555_vm2, %v738_v36, 0.0 }
 0x199   : > { %v2259_v40 = vsub.f32 %v2089_v44, %v663_v29  ;;  %v639_v41 = vpop.xlane.xlu1 %638  ;;  %v809_v42 = vsel %vm555_vm2, %v737_v39, 0.0 }
 0x19a   : > { %v636_v49 = vpop.xlane.xlu0 %635  ;;  %v680_v35 = vmul.f32 0.125, %v639_v41  ;;  %810 = vadd.xlane.f32.xlu0 %v809_v42  ;;  %765 = vadd.xlane.f32.xlu1 %v764_v43  ;;  %v728_v3 = vmul.f32 %v2262_v26, %v2262_v26 }
 0x19b   : > { %v679_v55 = vmul.f32 0.125, %v636_v49  ;;  %v727_v19 = vmul.f32 %v2259_v40, %v2259_v40 }
 0x19c   : > { %v2273_v47 = vsub.f32 %v2103_v51, %v680_v35  ;;  %v782_v10 = vsel %vm555_vm2, %v728_v3, 0.0 }
 0x19d   : > { %v2270_v44 = vsub.f32 %v2093_v46, %v679_v55  ;;  %v585_v1 = vpop.xlane.xlu1 %584  ;;  %v779_v2 = vsel %vm555_vm2, %v727_v19, 0.0 }
 0x19e   : > { %v582_v24 = vpop.xlane.xlu0 %581  ;;  %v662_v5 = vmul.f32 0.125, %v585_v1  ;;  %780 = vadd.xlane.f32.xlu0 %v779_v2  ;;  %813 = vadd.xlane.f32.xlu1 %v812_v0  ;;  %v744_v25 = vmul.f32 %v2273_v47, %v2273_v47 }
 0x19f   : > { %v661_v6 = vmul.f32 0.125, %v582_v24  ;;  %v743_v7 = vmul.f32 %v2270_v44, %v2270_v44 }
 0x1a0   : > { %v2281_v46 = vsub.f32 %v2101_v50, %v662_v5  ;;  %v830_v23 = vsel %vm555_vm2, %v744_v25, 0.0 }
 0x1a1   : > { %v2284_v51 = vsub.f32 %v2091_v45, %v661_v6  ;;  %v633_v8 = vpop.xlane.xlu1 %632  ;;  %v827_v9 = vsel %vm555_vm2, %v743_v7, 0.0 }
 0x1a2   : > { %v630_v11 = vpop.xlane.xlu0 %629  ;;  %v678_v12 = vmul.f32 0.125, %v633_v8  ;;  %828 = vadd.xlane.f32.xlu0 %v827_v9  ;;  %783 = vadd.xlane.f32.xlu1 %v782_v10  ;;  %v726_v45 = vmul.f32 %v2281_v46, %v2281_v46 }
 0x1a3   : > { %v677_v13 = vmul.f32 0.125, %v630_v11  ;;  %v725_v50 = vmul.f32 %v2284_v51, %v2284_v51 }
 0x1a4   : > { %v2298_v16 = vsub.f32 %v2107_v53, %v678_v12  ;;  %v776_v42 = vsel %vm555_vm2, %v726_v45, 0.0 }
 0x1a5   : > { %v2295_v15 = vsub.f32 %v2097_v48, %v677_v13  ;;  %v773_v17 = vsel %vm555_vm2, %v725_v50, 0.0  ;;  %v603_v21 = vpop.xlane.xlu1 %602 }
 0x1a6   : > { %v600_v29 = vpop.xlane.xlu0 %599  ;;  %774 = vadd.xlane.f32.xlu0 %v773_v17  ;;  %v668_v39 = vmul.f32 0.125, %v603_v21  ;;  %831 = vadd.xlane.f32.xlu1 %v830_v23  ;;  %v742_v35 = vmul.f32 %v2298_v16, %v2298_v16 }
 0x1a7   : > { %v667_v36 = vmul.f32 0.125, %v600_v29  ;;  %v741_v41 = vmul.f32 %v2295_v15, %v2295_v15 }
 0x1a8   : > { %v2309_v53 = vsub.f32 %v2119_v59, %v668_v39  ;;  %v824_v3 = vsel %vm555_vm2, %v742_v35, 0.0 }
 0x1a9   : > { %v2306_v48 = vsub.f32 %v2109_v54, %v667_v36  ;;  %v821_v43 = vsel %vm555_vm2, %v741_v41, 0.0  ;;  %v597_v49 = vpop.xlane.xlu1 %596 }
 0x1aa   : > { %822 = vadd.xlane.f32.xlu0 %v821_v43  ;;  %v594_v55 = vpop.xlane.xlu0 %593  ;;  %777 = vadd.xlane.f32.xlu1 %v776_v42  ;;  %v666_v19 = vmul.f32 0.125, %v597_v49  ;;  %v732_v5 = vmul.f32 %v2309_v53, %v2309_v53 }
 0x1ab   : > { %v665_v0 = vmul.f32 0.125, %v594_v55  ;;  %v731_v1 = vmul.f32 %v2306_v48, %v2306_v48 }
 0x1ac   : > { %v2317_v54 = vsub.f32 %v2123_v61, %v666_v19  ;;  %v794_v11 = vsel %vm555_vm2, %v732_v5, 0.0 }
 0x1ad   : > { %v2320_v59 = vsub.f32 %v2113_v56, %v665_v0  ;;  %v791_v2 = vsel %vm555_vm2, %v731_v1, 0.0  ;;  %v645_v24 = vpop.xlane.xlu1 %644 }
 0x1ae   : > { %792 = vadd.xlane.f32.xlu0 %v791_v2  ;;  %v642_v6 = vpop.xlane.xlu0 %641  ;;  %825 = vadd.xlane.f32.xlu1 %v824_v3  ;;  %v682_v7 = vmul.f32 0.125, %v645_v24  ;;  %v730_v56 = vmul.f32 %v2317_v54, %v2317_v54 }
 0x1af   : > { %v681_v8 = vmul.f32 0.125, %v642_v6  ;;  %v729_v61 = vmul.f32 %v2320_v59, %v2320_v59 }
 0x1b0   : > { %v2334_v10 = vsub.f32 %v2127_v63, %v682_v7  ;;  %v788_v21 = vsel %vm555_vm2, %v730_v56, 0.0 }
 0x1b1   : > { %v2331_v9 = vsub.f32 %v2121_v60, %v681_v8  ;;  %v785_v25 = vsel %vm555_vm2, %v729_v61, 0.0  ;;  %v651_v12 = vpop.xlane.xlu1 %650 }
 0x1b2   : > { %786 = vadd.xlane.f32.xlu0 %v785_v25  ;;  %v648_v13 = vpop.xlane.xlu0 %647  ;;  %795 = vadd.xlane.f32.xlu1 %v794_v11  ;;  %v684_v50 = vmul.f32 0.125, %v651_v12  ;;  %v746_v29 = vmul.f32 %v2334_v10, %v2334_v10 }
 0x1b3   : > { %v683_v45 = vmul.f32 0.125, %v648_v13  ;;  %v745_v17 = vmul.f32 %v2331_v9, %v2331_v9  ;;  %v2360_v13 = vld [vmem:[%s2710_s2] ss:$0 sm:$0xff] }
 0x1b4   : > { %v2345_v63 = vsub.f32 %v2125_v62, %v684_v50  ;;  %v836_v41 = vsel %vm555_vm2, %v746_v29, 0.0 }
 0x1b5   : > { %v2342_v60 = vsub.f32 %v2115_v57, %v683_v45  ;;  %v833_v23 = vsel %vm555_vm2, %v745_v17, 0.0 }
 0x1b6   : > { %834 = vadd.xlane.f32.xlu0 %v833_v23  ;;  %789 = vadd.xlane.f32.xlu1 %v788_v21  ;;  %v748_v57 = vmul.f32 %v2345_v63, %v2345_v63  ;;  %v2366_v21 = vld [vmem:[%s2711_s3] ss:$0 sm:$0xff] }
 0x1b7   : > { %v747_v39 = vmul.f32 %v2342_v60, %v2342_v60 }
 0x1b8   : > { %v842_v62 = vsel %vm555_vm2, %v748_v57, 0.0 }
 0x1b9   : > { %v839_v36 = vsel %vm555_vm2, %v747_v39, 0.0 }
 0x1ba   : > { %840 = vadd.xlane.f32.xlu0 %v839_v36  ;;  %837 = vadd.xlane.f32.xlu1 %v836_v41 }
 0x1be   : > { %843 = vadd.xlane.f32.xlu1 %v842_v62 }
 0x20a   : > { %v757_v42 = vpop.xlane.xlu0 %756 }
 0x20b   : > { %v847_v43 = vmul.f32 0.125, %v757_v42 }
 0x20d   : > { %v879_v49 = vadd.f32 1e-06, %v847_v43 }
 0x20e   : > { %v805_v35 = vpop.xlane.xlu0 %804  ;;  %v760_v55 = vpop.xlane.xlu1 %759 }
 0x20f   : > { %1795 = vrsqrt.f32 %v879_v49  ;;  %v863_v19 = vmul.f32 0.125, %v805_v35  ;;  %v848_v0 = vmul.f32 0.125, %v760_v55 }
 0x211   : > { %v895_v1 = vadd.f32 1e-06, %v863_v19  ;;  %v880_v2 = vadd.f32 1e-06, %v848_v0 }
 0x212   : > { %v751_v3 = vpop.xlane.xlu0 %750  ;;  %v808_v24 = vpop.xlane.xlu1 %807 }
 0x213   : > { %1797 = vrsqrt.f32 %v895_v1  ;;  %v845_v5 = vmul.f32 0.125, %v751_v3  ;;  %v864_v6 = vmul.f32 0.125, %v808_v24 }
 0x214   : > { %1799 = vrsqrt.f32 %v880_v2 }
 0x215   : > { %v877_v7 = vadd.f32 1e-06, %v845_v5  ;;  %v896_v8 = vadd.f32 1e-06, %v864_v6 }
 0x216   : > { %v799_v61 = vpop.xlane.xlu0 %798 }
 0x217   : > { %1801 = vrsqrt.f32 %v877_v7  ;;  %v861_v56 = vmul.f32 0.125, %v799_v61  ;;  %v754_v25 = vpop.xlane.xlu1 %753 }
 0x218   : > { %1803 = vrsqrt.f32 %v896_v8  ;;  %v846_v11 = vmul.f32 0.125, %v754_v25 }
 0x219   : > { %v1796_v12 = vpop.eup %1795  ;;  %v893_v50 = vadd.f32 1e-06, %v861_v56 }
 0x21a   : > { %v943_v45 = vmul.f32 %v1796_v12, %v2166_v31  ;;  %v878_v17 = vadd.f32 1e-06, %v846_v11 }
 0x21b   : > { %1805 = vrsqrt.f32 %v893_v50  ;;  %v769_v23 = vpop.xlane.xlu0 %768  ;;  %v802_v29 = vpop.xlane.xlu1 %801 }
 0x21c   : > { %v982_v39 = vmul.f32 %v2360_v13, %v943_v45  ;;  %1807 = vrsqrt.f32 %v878_v17  ;;  %v851_v36 = vmul.f32 0.125, %v769_v23  ;;  %v862_v41 = vmul.f32 0.125, %v802_v29 }
 0x21d   : > { %v1798_v57 = vpop.eup %1797 }
 0x21e   : > { %v1800_v62 = vpop.eup %1799  ;;  %v1021_v42 = vadd.f32 %v2366_v21, %v982_v39  ;;  %v959_v31 = vmul.f32 %v1798_v57, %v2169_v34  ;;  %v883_v43 = vadd.f32 1e-06, %v851_v36  ;;  %v894_v49 = vadd.f32 1e-06, %v862_v41 }
 0x21f   : > { %v944_v35 = vmul.f32 %v1800_v62, %v2174_v52  ;;  %v817_v55 = vpop.xlane.xlu0 %816  ;;  %v772_v19 = vpop.xlane.xlu1 %771 }
 0x220   : > { %v1085_v0 = vmul.f32 0.044715, %v1021_v42  ;;  %v998_v1 = vmul.f32 %v2360_v13, %v959_v31  ;;  %1809 = vrsqrt.f32 %v883_v43  ;;  %v867_v24 = vmul.f32 0.125, %v817_v55 }
 0x221   : > { %v1802_v2 = vpop.eup %1801  ;;  %v983_v3 = vmul.f32 %v2360_v13, %v944_v35  ;;  %1811 = vrsqrt.f32 %v894_v49  ;;  %v852_v5 = vmul.f32 0.125, %v772_v19  ;;  %v2382_v57 = vmul.f32 0.5, %v1021_v42 }
 0x222   : > { %v1804_v6 = vpop.eup %1803  ;;  %v1117_v7 = vmul.f32 %v1085_v0, %v1021_v42  ;;  %v1037_v34 = vadd.f32 %v2366_v21, %v998_v1  ;;  %v941_v8 = vmul.f32 %v1802_v2, %v2180_v18  ;;  %v899_v56 = vadd.f32 1e-06, %v867_v24 }
 0x223   : > { %v1022_v52 = vadd.f32 %v2366_v21, %v983_v3  ;;  %v960_v61 = vmul.f32 %v1804_v6, %v2185_v4  ;;  %v884_v50 = vadd.f32 1e-06, %v852_v5  ;;  %v763_v55 = vpop.xlane.xlu0 %762  ;;  %v2389_v3 = vpop.xlane.xlu1 %819 }
 0x224   : > { %v1149_v25 = vmul.f32 %v1117_v7, %v1021_v42  ;;  %v1101_v11 = vmul.f32 0.044715, %v1037_v34  ;;  %v980_v12 = vmul.f32 %v2360_v13, %v941_v8  ;;  %1813 = vrsqrt.f32 %v899_v56 }
 0x225   : > { %v1806_v45 = vpop.eup %1805  ;;  %v1086_v17 = vmul.f32 0.044715, %v1022_v52  ;;  %v999_v23 = vmul.f32 %v2360_v13, %v960_v61  ;;  %1815 = vrsqrt.f32 %v884_v50  ;;  %v2386_v19 = vmul.f32 0.5, %v1037_v34 }
 0x226   : > { %v1808_v29 = vpop.eup %1807  ;;  %v1181_v39 = vadd.f32 %v1149_v25, %v1021_v42  ;;  %v1133_v36 = vmul.f32 %v1101_v11, %v1037_v34  ;;  %v1019_v18 = vadd.f32 %v2366_v21, %v980_v12  ;;  %v957_v41 = vmul.f32 %v1806_v45, %v2192_v20 }
 0x227   : > { %v1118_v4 = vmul.f32 %v1086_v17, %v1022_v52  ;;  %v1038_v62 = vadd.f32 %v2366_v21, %v999_v23  ;;  %v942_v31 = vmul.f32 %v1808_v29, %v2204_v22  ;;  %v2396_v50 = vmul.f32 0.5, %v1022_v52 }
 0x228   : > { %v1213_v43 = vmul.f32 0.7978846, %v1181_v39  ;;  %v1165_v49 = vmul.f32 %v1133_v36, %v1037_v34  ;;  %v1083_v35 = vmul.f32 0.044715, %v1019_v18  ;;  %v996_v2 = vmul.f32 %v2360_v13, %v957_v41  ;;  %v2400_v36 = vpop.xlane.xlu0 %810 }
 0x229   : > { %v1150_v0 = vmul.f32 %v1118_v4, %v1022_v52  ;;  %v1102_v1 = vmul.f32 0.044715, %v1038_v62  ;;  %v981_v5 = vmul.f32 %v2360_v13, %v942_v31  ;;  %v2398_v23 = vmul.f32 0.5, %v1019_v18 }
 0x22a   : > { %v1810_v20 = vpop.eup %1809  ;;  %1817 = vtanh.f32 %v1213_v43  ;;  %v1197_v42 = vadd.f32 %v1165_v49, %v1037_v34  ;;  %v1115_v24 = vmul.f32 %v1083_v35, %v1019_v18  ;;  %v1035_v8 = vadd.f32 %v2366_v21, %v996_v2  ;;  %v2403_v43 = vpop.xlane.xlu1 %765 }
 0x22b   : > { %v1812_v22 = vpop.eup %1811  ;;  %v1182_v6 = vadd.f32 %v1150_v0, %v1022_v52  ;;  %v1134_v7 = vmul.f32 %v1102_v1, %v1038_v62  ;;  %v947_v61 = vmul.f32 %v1810_v20, %v2213_v27  ;;  %v1020_v11 = vadd.f32 %v2366_v21, %v981_v5 }
 0x22c   : > { %v1229_v56 = vmul.f32 0.7978846, %v1197_v42  ;;  %v1147_v25 = vmul.f32 %v1115_v24, %v1019_v18  ;;  %v958_v12 = vmul.f32 %v1812_v22, %v2201_v14  ;;  %v1099_v17 = vmul.f32 0.044715, %v1035_v8 }
 0x22d   : > { %v1214_v45 = vmul.f32 0.7978846, %v1182_v6  ;;  %v1166_v34 = vmul.f32 %v1134_v7, %v1038_v62  ;;  %v1084_v39 = vmul.f32 0.044715, %v1020_v11  ;;  %v986_v31 = vmul.f32 %v2360_v13, %v947_v61 }
 0x22e   : > { %1819 = vtanh.f32 %v1229_v56  ;;  %v1179_v29 = vadd.f32 %v1147_v25, %v1019_v18  ;;  %v1814_v41 = vpop.eup %1813  ;;  %v1131_v4 = vmul.f32 %v1099_v17, %v1035_v8  ;;  %v997_v49 = vmul.f32 %v2360_v13, %v958_v12  ;;  %v781_v12 = vpop.xlane.xlu0 %780 }
 0x22f   : > { %1821 = vtanh.f32 %v1214_v45  ;;  %v1198_v27 = vadd.f32 %v1166_v34, %v1038_v62  ;;  %v1116_v52 = vmul.f32 %v1084_v39, %v1020_v11  ;;  %v963_v35 = vmul.f32 %v1814_v41, %v2223_v30  ;;  %v1816_v20 = vpop.eup %1815  ;;  %v2421_v39 = vpop.xlane.xlu1 %813 }
 0x230   : > { %v1211_v14 = vmul.f32 0.7978846, %v1179_v29  ;;  %v2407_v0 = vmul.f32 0.5, %v1038_v62  ;;  %v1163_v1 = vmul.f32 %v1131_v4, %v1035_v8  ;;  %v1025_v2 = vadd.f32 %v2366_v21, %v986_v31 }
 0x231   : > { %v1230_v18 = vmul.f32 0.7978846, %v1198_v27  ;;  %v1148_v42 = vmul.f32 %v1116_v52, %v1020_v11  ;;  %v2411_v24 = vadd.f32 %v2366_v21, %v997_v49  ;;  %v1002_v5 = vmul.f32 %v2360_v13, %v963_v35 }
 0x232   : > { %1823 = vtanh.f32 %v1211_v14  ;;  %v2414_v22 = vmul.f32 0.5, %v1035_v8  ;;  %v1195_v6 = vadd.f32 %v1163_v1, %v1035_v8  ;;  %v1089_v7 = vmul.f32 0.044715, %v1025_v2 }
 0x233   : > { %1825 = vtanh.f32 %v1230_v18  ;;  %v1180_v62 = vadd.f32 %v1148_v42, %v1020_v11  ;;  %v1100_v61 = vmul.f32 0.044715, %v2411_v24  ;;  %v2418_v56 = vadd.f32 %v2366_v21, %v1002_v5 }
 0x234   : > { %v1818_v30 = vpop.eup %1817  ;;  %v849_v25 = vmul.f32 0.125, %v763_v55  ;;  %v1227_v34 = vmul.f32 0.7978846, %v1195_v6  ;;  %v1121_v17 = vmul.f32 %v1089_v7, %v1025_v2  ;;  %v948_v29 = vmul.f32 %v1816_v20, %v2209_v28  ;;  %v829_v7 = vpop.xlane.xlu0 %828 }
 0x235   : > { %v1277_v45 = vadd.f32 1.0, %v1818_v30  ;;  %v2423_v41 = vmul.f32 0.5, %v1020_v11  ;;  %v1212_v8 = vmul.f32 0.7978846, %v1180_v62  ;;  %v1132_v27 = vmul.f32 %v1100_v61, %v2411_v24 }
 0x236   : > { %v1105_v4 = vmul.f32 0.044715, %v2418_v56  ;;  %1827 = vtanh.f32 %v1227_v34  ;;  %v1153_v55 = vmul.f32 %v1121_v17, %v1025_v2  ;;  %v987_v14 = vmul.f32 %v2360_v13, %v948_v29 }
 0x237   : > { %v1309_v31 = vmul.f32 %v1277_v45, %v2382_v57  ;;  %1829 = vtanh.f32 %v1212_v8  ;;  %v1164_v28 = vmul.f32 %v1132_v27, %v2411_v24  ;;  %v881_v49 = vadd.f32 1e-06, %v849_v25  ;;  %v784_v45 = vpop.xlane.xlu1 %783 }
 0x238   : > { %v1820_v52 = vpop.eup %1819  ;;  %v1137_v11 = vmul.f32 %v1105_v4, %v2418_v56  ;;  %v1185_v1 = vadd.f32 %v1153_v55, %v1025_v2  ;;  %v2439_v20 = vadd.f32 %v2366_v21, %v987_v14  ;;  %v2446_v62 = vmul.f32 0.5, %v1025_v2 }
 0x239   : > { %v1822_v35 = vpop.eup %1821  ;;  %v1670_v57 = vpack.c.bf16 %v1309_v31, %v1309_v31  ;;  %v1293_v18 = vadd.f32 1.0, %v1820_v52  ;;  %v1196_v5 = vadd.f32 %v1164_v28, %v2411_v24  ;;  %1831 = vrsqrt.f32 %v881_v49 }
 0x23a   : > { %v1278_v42 = vadd.f32 1.0, %v1822_v35  ;;  %v1169_v6 = vmul.f32 %v1137_v11, %v2418_v56  ;;  %v1217_v61 = vmul.f32 0.7978846, %v1185_v1  ;;  %v1090_v25 = vmul.f32 0.044715, %v2439_v20 }
 0x23b   : > { %1470 = vst.msk [vmem:[%s2434_s5 + $0x8] sm:$0xf] %vm1467_vm3, %v1670_v57  ;;  %v1325_v30 = vmul.f32 %v1293_v18, %v2386_v19  ;;  %v1228_v29 = vmul.f32 0.7978846, %v1196_v5  ;;  %v868_v27 = vmul.f32 0.125, %v2389_v3  ;;  %v865_v49 = vmul.f32 0.125, %v2400_v36  ;;  %v775_v18 = vpop.xlane.xlu0 %774 }
 0x23c   : > { %v1824_v34 = vpop.eup %1823  ;;  %v1310_v17 = vmul.f32 %v1278_v42, %v2396_v50  ;;  %v1201_v8 = vadd.f32 %v1169_v6, %v2418_v56  ;;  %1833 = vtanh.f32 %v1217_v61  ;;  %v1122_v19 = vmul.f32 %v1090_v25, %v2439_v20  ;;  %v832_v6 = vpop.xlane.xlu1 %831 }
 0x23d   : > { %v1826_v4 = vpop.eup %1825  ;;  %v1686_v31 = vpack.c.bf16 %v1325_v30, %v1325_v30  ;;  %v1275_v55 = vadd.f32 1.0, %v1824_v34  ;;  %1835 = vtanh.f32 %v1228_v29  ;;  %v900_v11 = vadd.f32 1e-06, %v868_v27 }
 0x23e   : > { %v1671_v2 = vpack.c.bf16 %v1310_v17, %v1310_v17  ;;  %v1294_v14 = vadd.f32 1.0, %v1826_v4  ;;  %v1233_v52 = vmul.f32 0.7978846, %v1201_v8  ;;  %v1154_v28 = vmul.f32 %v1122_v19, %v2439_v20 }
 0x23f   : > { %1486 = vst.msk [vmem:[%s2434_s5 + $0x48] sm:$0xf] %vm1467_vm3, %v1686_v31  ;;  %v1307_v50 = vmul.f32 %v1275_v55, %v2398_v23  ;;  %v850_v35 = vmul.f32 0.125, %v2403_v43  ;;  %v855_v57 = vmul.f32 0.125, %v781_v12  ;;  %v897_v5 = vadd.f32 1e-06, %v865_v49 }
 0x240   : > { %1471 = vst.msk [vmem:[%s2434_s5 + $0xc] sm:$0xf] %vm1467_vm3, %v1671_v2  ;;  %v1326_v3 = vmul.f32 %v1294_v14, %v2407_v0  ;;  %1837 = vtanh.f32 %v1233_v52  ;;  %v1828_v1 = vpop.eup %1827  ;;  %v1186_v23 = vadd.f32 %v1154_v28, %v2439_v20  ;;  %v866_v43 = vmul.f32 0.125, %v2421_v39  ;;  %v823_v14 = vpop.xlane.xlu0 %822 }
 0x241   : > { %v1668_v42 = vpack.c.bf16 %v1307_v50, %v1307_v50  ;;  %1839 = vrsqrt.f32 %v900_v11  ;;  %v1830_v30 = vpop.eup %1829  ;;  %v1291_v61 = vadd.f32 1.0, %v1828_v1  ;;  %v882_v25 = vadd.f32 1e-06, %v850_v35 }
 0x242   : > { %v1687_v36 = vpack.c.bf16 %v1326_v3, %v1326_v3  ;;  %v887_v34 = vadd.f32 1e-06, %v855_v57  ;;  %v1276_v0 = vadd.f32 1.0, %v1830_v30  ;;  %v1218_v17 = vmul.f32 0.7978846, %v1186_v23 }
 0x243   : > { %1468 = vst.msk [vmem:[%s2434_s5] sm:$0xf] %vm1467_vm3, %v1668_v42  ;;  %1841 = vrsqrt.f32 %v897_v5  ;;  %v1832_v12 = vpop.eup %1831  ;;  %v1323_v29 = vmul.f32 %v1291_v61, %v2414_v22  ;;  %v871_v8 = vmul.f32 0.125, %v829_v7  ;;  %v856_v27 = vmul.f32 0.125, %v784_v45  ;;  %v778_v45 = vpop.xlane.xlu1 %777 }
 0x244   : > { %1487 = vst.msk [vmem:[%s2434_s5 + $0x4c] sm:$0xf] %vm1467_vm3, %v1687_v36  ;;  %1843 = vrsqrt.f32 %v882_v25  ;;  %v1308_v4 = vmul.f32 %v1276_v0, %v2423_v41  ;;  %v945_v31 = vmul.f32 %v1832_v12, %v2234_v33  ;;  %v898_v55 = vadd.f32 1e-06, %v866_v43  ;;  %v793_v12 = vpop.xlane.xlu0 %792 }
 0x245   : > { %1845 = vtanh.f32 %v1218_v17  ;;  %v1684_v19 = vpack.c.bf16 %v1323_v29, %v1323_v29  ;;  %v903_v2 = vadd.f32 1e-06, %v871_v8  ;;  %v888_v39 = vadd.f32 1e-06, %v856_v27 }
 0x246   : > { %1847 = vrsqrt.f32 %v887_v34  ;;  %v1834_v52 = vpop.eup %1833  ;;  %v1669_v50 = vpack.c.bf16 %v1308_v4, %v1308_v4  ;;  %v984_v22 = vmul.f32 %v2360_v13, %v945_v31  ;;  %v853_v7 = vmul.f32 0.125, %v775_v18 }
 0x247   : > { %1849 = vrsqrt.f32 %v898_v55  ;;  %v1836_v28 = vpop.eup %1835  ;;  %1484 = vst.msk [vmem:[%s2434_s5 + $0x40] sm:$0xf] %vm1467_vm3, %v1684_v19  ;;  %v1281_v41 = vadd.f32 1.0, %v1834_v52  ;;  %v1068_v33 = vmul.f32 0.5, %v2411_v24  ;;  %v872_v11 = vmul.f32 0.125, %v832_v6 }
 0x248   : > { %1851 = vrsqrt.f32 %v903_v2  ;;  %1469 = vst.msk [vmem:[%s2434_s5 + $0x4] sm:$0xf] %vm1467_vm3, %v1669_v50  ;;  %v1292_v49 = vadd.f32 1.0, %v1836_v28  ;;  %v1023_v3 = vadd.f32 %v2366_v21, %v984_v22  ;;  %v885_v35 = vadd.f32 1e-06, %v853_v7 }
 0x249   : > { %v869_v57 = vmul.f32 0.125, %v823_v14  ;;  %v1313_v42 = vmul.f32 %v1281_v41, %v2446_v62  ;;  %v1073_v18 = vmul.f32 0.5, %v2418_v56  ;;  %1853 = vrsqrt.f32 %v888_v39 }
 0x24a   : > { %v1838_v1 = vpop.eup %1837  ;;  %v854_v23 = vmul.f32 0.125, %v778_v45  ;;  %v1324_v30 = vmul.f32 %v1292_v49, %v1068_v33  ;;  %v1087_v36 = vmul.f32 0.044715, %v1023_v3  ;;  %v904_v6 = vadd.f32 1e-06, %v872_v11  ;;  %v826_v11 = vpop.xlane.xlu1 %825 }
 0x24b   : > { %v1840_v5 = vpop.eup %1839  ;;  %v1297_v24 = vadd.f32 1.0, %v1838_v1  ;;  %v1674_v61 = vpack.c.bf16 %v1313_v42, %v1313_v42  ;;  %v1058_v25 = vmul.f32 0.5, %v2439_v20  ;;  %1855 = vrsqrt.f32 %v885_v35 }
 0x24c   : > { %v964_v34 = vmul.f32 %v1840_v5, %v2226_v58  ;;  %v1685_v17 = vpack.c.bf16 %v1324_v30, %v1324_v30  ;;  %v1119_v43 = vmul.f32 %v1087_v36, %v1023_v3  ;;  %v901_v56 = vadd.f32 1e-06, %v869_v57 }
 0x24d   : > { %v1842_v0 = vpop.eup %1841  ;;  %v1329_v62 = vmul.f32 %v1297_v24, %v1073_v18  ;;  %1474 = vst.msk [vmem:[%s2434_s5 + $0x18] sm:$0xf] %vm1467_vm3, %v1674_v61  ;;  %v2484_v8 = vmul.f32 0.5, %v1023_v3  ;;  %v886_v4 = vadd.f32 1e-06, %v854_v23  ;;  %1857 = vrsqrt.f32 %v904_v6 }
 0x24e   : > { %v1844_v29 = vpop.eup %1843  ;;  %v1003_v27 = vmul.f32 %v2360_v13, %v964_v34  ;;  %v961_v20 = vmul.f32 %v1842_v0, %v2248_v37  ;;  %1485 = vst.msk [vmem:[%s2434_s5 + $0x44] sm:$0xf] %vm1467_vm3, %v1685_v17  ;;  %v1151_v55 = vmul.f32 %v1119_v43, %v1023_v3  ;;  %v859_v50 = vmul.f32 0.125, %v793_v12 }
 0x24f   : > { %v1846_v31 = vpop.eup %1845  ;;  %v1690_v58 = vpack.c.bf16 %v1329_v62, %v1329_v62  ;;  %v946_v19 = vmul.f32 %v1844_v29, %v2237_v38  ;;  %1859 = vrsqrt.f32 %v901_v56  ;;  %v2504_v24 = vmul.f32 0.125, %v826_v11 }
 0x250   : > { %v1848_v2 = vpop.eup %1847  ;;  %v1282_v39 = vadd.f32 1.0, %v1846_v31  ;;  %v1042_v14 = vadd.f32 %v2366_v21, %v1003_v27  ;;  %v1000_v52 = vmul.f32 %v2360_v13, %v961_v20  ;;  %v1183_v37 = vadd.f32 %v1151_v55, %v1023_v3 }
 0x251   : > { %v1850_v22 = vpop.eup %1849  ;;  %1490 = vst.msk [vmem:[%s2434_s5 + $0x58] sm:$0xf] %vm1467_vm3, %v1690_v58  ;;  %v985_v7 = vmul.f32 %v2360_v13, %v946_v19  ;;  %v951_v45 = vmul.f32 %v1848_v2, %v2259_v40  ;;  %1861 = vrsqrt.f32 %v886_v4  ;;  %v2501_v23 = vadd.f32 1e-06, %v859_v50 }
 0x252   : > { %v1852_v28 = vpop.eup %1851  ;;  %v1314_v41 = vmul.f32 %v1282_v39, %v1058_v25  ;;  %v1106_v38 = vmul.f32 0.044715, %v1042_v14  ;;  %v1039_v33 = vadd.f32 %v2366_v21, %v1000_v52  ;;  %v1215_v49 = vmul.f32 0.7978846, %v1183_v37 }
 0x253   : > { %v1024_v35 = vadd.f32 %v2366_v21, %v985_v7  ;;  %v990_v57 = vmul.f32 %v2360_v13, %v951_v45  ;;  %v962_v3 = vmul.f32 %v1850_v22, %v2245_v32  ;;  %v1854_v1 = vpop.eup %1853  ;;  %v967_v32 = vmul.f32 %v1852_v28, %v2270_v44 }
 0x254   : > { %v1675_v42 = vpack.c.bf16 %v1314_v41, %v1314_v41  ;;  %v1138_v18 = vmul.f32 %v1106_v38, %v1042_v14  ;;  %v1103_v40 = vmul.f32 0.044715, %v1039_v33  ;;  %1863 = vtanh.f32 %v1215_v49 }
 0x255   : > { %v1088_v5 = vmul.f32 0.044715, %v1024_v35  ;;  %v1029_v30 = vadd.f32 %v2366_v21, %v990_v57  ;;  %v1856_v36 = vpop.eup %1855  ;;  %v1001_v25 = vmul.f32 %v2360_v13, %v962_v3  ;;  %v2510_v34 = vmul.f32 0.5, %v1042_v14 }
 0x256   : > { %1475 = vst.msk [vmem:[%s2434_s5 + $0x1c] sm:$0xf] %vm1467_vm3, %v1675_v42  ;;  %v1170_v6 = vmul.f32 %v1138_v18, %v1042_v14  ;;  %v1135_v61 = vmul.f32 %v1103_v40, %v1039_v33  ;;  %v952_v62 = vmul.f32 %v1854_v1, %v2262_v26  ;;  %v1006_v29 = vmul.f32 %v2360_v13, %v967_v32 }
 0x257   : > { %v1120_v0 = vmul.f32 %v1088_v5, %v1024_v35  ;;  %v1093_v17 = vmul.f32 0.044715, %v1029_v30  ;;  %v1040_v12 = vadd.f32 %v2366_v21, %v1001_v25  ;;  %v1858_v27 = vpop.eup %1857  ;;  %v949_v58 = vmul.f32 %v1856_v36, %v2284_v51 }
 0x258   : > { %v1202_v43 = vadd.f32 %v1170_v6, %v1042_v14  ;;  %v1167_v56 = vmul.f32 %v1135_v61, %v1039_v33  ;;  %v991_v31 = vmul.f32 %v2360_v13, %v952_v62  ;;  %v2517_v55 = vmul.f32 0.5, %v1039_v33 }
 0x259   : > { %v1152_v20 = vmul.f32 %v1120_v0, %v1024_v35  ;;  %v1125_v4 = vmul.f32 %v1093_v17, %v1029_v30  ;;  %v1104_v2 = vmul.f32 0.044715, %v1040_v12  ;;  %v1860_v39 = vpop.eup %1859  ;;  %v1045_v52 = vadd.f32 %v2366_v21, %v1006_v29 }
 0x25a   : > { %v1234_v44 = vmul.f32 0.7978846, %v1202_v43  ;;  %v1199_v19 = vadd.f32 %v1167_v56, %v1039_v33  ;;  %v1030_v50 = vadd.f32 %v2366_v21, %v991_v31  ;;  %v988_v45 = vmul.f32 %v2360_v13, %v949_v58 }
 0x25b   : > { %v1184_v26 = vadd.f32 %v1152_v20, %v1024_v35  ;;  %v1157_v14 = vmul.f32 %v1125_v4, %v1029_v30  ;;  %v1862_v22 = vpop.eup %1861  ;;  %v1136_v7 = vmul.f32 %v1104_v2, %v1040_v12  ;;  %v2522_v28 = vmul.f32 0.5, %v1024_v35 }
 0x25c   : > { %1865 = vtanh.f32 %v1234_v44  ;;  %v1231_v37 = vmul.f32 0.7978846, %v1199_v19  ;;  %v1109_v38 = vmul.f32 0.044715, %v1045_v52  ;;  %v2524_v33 = vmul.f32 0.5, %v1029_v30  ;;  %v787_v19 = vpop.xlane.xlu0 %786 }
 0x25d   : > { %v1216_v51 = vmul.f32 0.7978846, %v1184_v26  ;;  %v1189_v41 = vadd.f32 %v1157_v14, %v1029_v30  ;;  %v1168_v11 = vmul.f32 %v1136_v7, %v1040_v12  ;;  %v1094_v49 = vmul.f32 0.044715, %v1030_v50 }
 0x25e   : > { %1867 = vtanh.f32 %v1231_v37  ;;  %v1864_v57 = vpop.eup %1863  ;;  %v1141_v1 = vmul.f32 %v1109_v38, %v1045_v52  ;;  %v1027_v42 = vadd.f32 %v2366_v21, %v988_v45  ;;  %v968_v35 = vmul.f32 %v1858_v27, %v2273_v47  ;;  %v796_v27 = vpop.xlane.xlu1 %795 }
 0x25f   : > { %1869 = vtanh.f32 %v1216_v51  ;;  %v1221_v3 = vmul.f32 0.7978846, %v1189_v41  ;;  %v1279_v18 = vadd.f32 1.0, %v1864_v57  ;;  %v1200_v40 = vadd.f32 %v1168_v11, %v1040_v12 }
 0x260   : > { %v1126_v5 = vmul.f32 %v1094_v49, %v1030_v50  ;;  %v2528_v36 = vmul.f32 0.5, %v1040_v12  ;;  %v1173_v6 = vmul.f32 %v1141_v1, %v1045_v52  ;;  %v1091_v61 = vmul.f32 0.044715, %v1027_v42 }
 0x261   : > { %1871 = vtanh.f32 %v1221_v3  ;;  %v1311_v30 = vmul.f32 %v1279_v18, %v2484_v8  ;;  %v1232_v25 = vmul.f32 0.7978846, %v1200_v40  ;;  %v1007_v0 = vmul.f32 %v2360_v13, %v968_v35  ;;  %v835_v35 = vpop.xlane.xlu0 %834 }
 0x262   : > { %v1158_v32 = vmul.f32 %v1126_v5, %v1030_v50  ;;  %v1205_v17 = vadd.f32 %v1173_v6, %v1045_v52  ;;  %v1123_v62 = vmul.f32 %v1091_v61, %v1027_v42  ;;  %v965_v43 = vmul.f32 %v1860_v39, %v2295_v15  ;;  %v790_v57 = vpop.xlane.xlu1 %789 }
 0x263   : > { %v950_v56 = vmul.f32 %v1862_v22, %v2281_v46  ;;  %v1672_v29 = vpack.c.bf16 %v1311_v30, %v1311_v30  ;;  %1873 = vtanh.f32 %v1232_v25  ;;  %v2535_v12 = vadd.f32 %v2366_v21, %v1007_v0 }
 0x264   : > { %v1190_v47 = vadd.f32 %v1158_v32, %v1030_v50  ;;  %v1237_v20 = vmul.f32 0.7978846, %v1205_v17  ;;  %v1155_v8 = vmul.f32 %v1123_v62, %v1027_v42  ;;  %v1004_v4 = vmul.f32 %v2360_v13, %v965_v43 }
 0x265   : > { %v989_v31 = vmul.f32 %v2360_v13, %v950_v56  ;;  %1472 = vst.msk [vmem:[%s2434_s5 + $0x10] sm:$0xf] %vm1467_vm3, %v1672_v29  ;;  %v2541_v44 = vmul.f32 0.5, %v1045_v52  ;;  %v1110_v46 = vmul.f32 0.044715, %v2535_v12  ;;  %1875 = vrsqrt.f32 %v2501_v23 }
 0x266   : > { %v1866_v58 = vpop.eup %1865  ;;  %v1222_v15 = vmul.f32 0.7978846, %v1190_v47  ;;  %1877 = vtanh.f32 %v1237_v20  ;;  %v1187_v39 = vadd.f32 %v1155_v8, %v1027_v42  ;;  %v2546_v26 = vadd.f32 %v2366_v21, %v1004_v4 }
 0x267   : > { %v1298_v2 = vadd.f32 1.0, %v1866_v58  ;;  %v2548_v22 = vmul.f32 0.5, %v1030_v50  ;;  %v1142_v37 = vmul.f32 %v1110_v46, %v2535_v12  ;;  %v2552_v52 = vadd.f32 %v2366_v21, %v989_v31 }
 0x268   : > { %v1868_v14 = vpop.eup %1867  ;;  %1879 = vtanh.f32 %v1222_v15  ;;  %v1219_v51 = vmul.f32 0.7978846, %v1187_v39  ;;  %v902_v41 = vadd.f32 1e-06, %v2504_v24  ;;  %v2556_v11 = vmul.f32 0.5, %v1027_v42 }
 0x269   : > { %v1870_v7 = vpop.eup %1869  ;;  %v1330_v45 = vmul.f32 %v1298_v2, %v2510_v34  ;;  %v1295_v23 = vadd.f32 1.0, %v1868_v14  ;;  %v1174_v50 = vmul.f32 %v1142_v37, %v2535_v12  ;;  %v1107_v49 = vmul.f32 0.044715, %v2546_v26  ;;  %v841_v14 = vpop.xlane.xlu0 %840 }
 0x26a   : > { %v1280_v38 = vadd.f32 1.0, %v1870_v7  ;;  %1881 = vtanh.f32 %v1219_v51  ;;  %v1092_v34 = vmul.f32 0.044715, %v2552_v52  ;;  %v860_v56 = vmul.f32 0.125, %v796_v27 }
 0x26b   : > { %v1872_v3 = vpop.eup %1871  ;;  %v1691_v1 = vpack.c.bf16 %v1330_v45, %v1330_v45  ;;  %v1327_v18 = vmul.f32 %v1295_v23, %v2517_v55  ;;  %v1206_v5 = vadd.f32 %v1174_v50, %v2535_v12  ;;  %v1139_v42 = vmul.f32 %v1107_v49, %v2546_v26 }
 0x26c   : > { %v1312_v40 = vmul.f32 %v1280_v38, %v2522_v28  ;;  %v1285_v24 = vadd.f32 1.0, %v1872_v3  ;;  %v1124_v61 = vmul.f32 %v1092_v34, %v2552_v52  ;;  %1883 = vrsqrt.f32 %v902_v41 }
 0x26d   : > { %1491 = vst.msk [vmem:[%s2434_s5 + $0x5c] sm:$0xf] %vm1467_vm3, %v1691_v1  ;;  %v1688_v6 = vpack.c.bf16 %v1327_v18, %v1327_v18  ;;  %v857_v55 = vmul.f32 0.125, %v787_v19  ;;  %v1874_v30 = vpop.eup %1873  ;;  %v1238_v0 = vmul.f32 0.7978846, %v1206_v5  ;;  %v1171_v28 = vmul.f32 %v1139_v42, %v2546_v26 }
 0x26e   : > { %v1673_v25 = vpack.c.bf16 %v1312_v40, %v1312_v40  ;;  %v1317_v32 = vmul.f32 %v1285_v24, %v2524_v33  ;;  %v1296_v17 = vadd.f32 1.0, %v1874_v30  ;;  %v1156_v62 = vmul.f32 %v1124_v61, %v2552_v52  ;;  %v838_v33 = vpop.xlane.xlu1 %837 }
 0x26f   : > { %1488 = vst.msk [vmem:[%s2434_s5 + $0x50] sm:$0xf] %vm1467_vm3, %v1688_v6  ;;  %v889_v43 = vadd.f32 1e-06, %v857_v55  ;;  %v1876_v29 = vpop.eup %1875  ;;  %1885 = vtanh.f32 %v1238_v0  ;;  %v1203_v20 = vadd.f32 %v1171_v28, %v2546_v26  ;;  %v873_v8 = vmul.f32 0.125, %v835_v35 }
 0x270   : > { %1473 = vst.msk [vmem:[%s2434_s5 + $0x14] sm:$0xf] %vm1467_vm3, %v1673_v25  ;;  %v1678_v47 = vpack.c.bf16 %v1317_v32, %v1317_v32  ;;  %v1878_v4 = vpop.eup %1877  ;;  %v1328_v31 = vmul.f32 %v1296_v17, %v2528_v36  ;;  %v1188_v58 = vadd.f32 %v1156_v62, %v2552_v52  ;;  %v955_v15 = vmul.f32 %v1876_v29, %v2306_v48 }
 0x271   : > { %1887 = vrsqrt.f32 %v889_v43  ;;  %v1301_v27 = vadd.f32 1.0, %v1878_v4  ;;  %v1235_v19 = vmul.f32 0.7978846, %v1203_v20  ;;  %v892_v2 = vadd.f32 1e-06, %v860_v56 }
 0x272   : > { %v1880_v46 = vpop.eup %1879  ;;  %1478 = vst.msk [vmem:[%s2434_s5 + $0x28] sm:$0xf] %vm1467_vm3, %v1678_v47  ;;  %v858_v39 = vmul.f32 0.125, %v790_v57  ;;  %v1689_v37 = vpack.c.bf16 %v1328_v31, %v1328_v31  ;;  %v1220_v45 = vmul.f32 0.7978846, %v1188_v58  ;;  %v994_v23 = vmul.f32 %v2360_v13, %v955_v15 }
 0x273   : > { %v1286_v7 = vadd.f32 1.0, %v1880_v46  ;;  %v1333_v36 = vmul.f32 %v1301_v27, %v2541_v44  ;;  %1889 = vtanh.f32 %v1235_v19  ;;  %v905_v51 = vadd.f32 1e-06, %v873_v8  ;;  %v844_v44 = vpop.xlane.xlu1 %843 }
 0x274   : > { %v890_v48 = vadd.f32 1e-06, %v858_v39  ;;  %v1882_v41 = vpop.eup %1881  ;;  %1489 = vst.msk [vmem:[%s2434_s5 + $0x54] sm:$0xf] %vm1467_vm3, %v1689_v37  ;;  %1891 = vtanh.f32 %v1220_v45  ;;  %v2587_v50 = vadd.f32 %v2366_v21, %v994_v23  ;;  %v875_v49 = vmul.f32 0.125, %v841_v14 }
 0x275   : > { %v1318_v38 = vmul.f32 %v1286_v7, %v2548_v22  ;;  %v1694_v57 = vpack.c.bf16 %v1333_v36, %v1333_v36  ;;  %v1283_v3 = vadd.f32 1.0, %v1882_v41  ;;  %1893 = vrsqrt.f32 %v892_v2 }
 0x276   : > { %v874_v1 = vmul.f32 0.125, %v838_v33  ;;  %v1884_v18 = vpop.eup %1883  ;;  %v1097_v40 = vmul.f32 0.044715, %v2587_v50  ;;  %1895 = vrsqrt.f32 %v905_v51  ;;  %v907_v5 = vadd.f32 1e-06, %v875_v49 }
 0x277   : > { %v1679_v34 = vpack.c.bf16 %v1318_v38, %v1318_v38  ;;  %1494 = vst.msk [vmem:[%s2434_s5 + $0x68] sm:$0xf] %vm1467_vm3, %v1694_v57  ;;  %v1315_v22 = vmul.f32 %v1283_v3, %v2556_v11  ;;  %v966_v24 = vmul.f32 %v1884_v18, %v2298_v16  ;;  %1897 = vrsqrt.f32 %v890_v48 }
 0x278   : > { %v1129_v42 = vmul.f32 %v1097_v40, %v2587_v50  ;;  %v906_v35 = vadd.f32 1e-06, %v874_v1  ;;  %v876_v6 = vmul.f32 0.125, %v844_v44  ;;  %v1078_v30 = vmul.f32 0.5, %v2535_v12  ;;  %v1924_v40 = vld [vmem:[%s2710_s2] ss:$0 sm:$0xff] }
 0x279   : > { %1479 = vst.msk [vmem:[%s2434_s5 + $0x2c] sm:$0xf] %vm1467_vm3, %v1679_v34  ;;  %v1886_v61 = vpop.eup %1885  ;;  %v1676_v55 = vpack.c.bf16 %v1315_v22, %v1315_v22  ;;  %v1005_v25 = vmul.f32 %v2360_v13, %v966_v24  ;;  %1899 = vrsqrt.f32 %v907_v5  ;;  %v1075_v8 = vmul.f32 0.5, %v2546_v26 }
 0x27a   : > { %v1302_v11 = vadd.f32 1.0, %v1886_v61  ;;  %v1161_v16 = vmul.f32 %v1129_v42, %v2587_v50  ;;  %1901 = vrsqrt.f32 %v906_v35  ;;  %v908_v0 = vadd.f32 1e-06, %v876_v6 }
 0x27b   : > { %v1888_v32 = vpop.eup %1887  ;;  %1476 = vst.msk [vmem:[%s2434_s5 + $0x20] sm:$0xf] %vm1467_vm3, %v1676_v55  ;;  %v2603_v28 = vadd.f32 %v2366_v21, %v1005_v25  ;;  %v1060_v58 = vmul.f32 0.5, %v2552_v52 }
 0x27c   : > { %v953_v17 = vmul.f32 %v1888_v32, %v2320_v59  ;;  %v1334_v62 = vmul.f32 %v1302_v11, %v1078_v30  ;;  %v1193_v43 = vadd.f32 %v1161_v16, %v2587_v50  ;;  %1903 = vrsqrt.f32 %v908_v0 }
 0x27d   : > { %v1890_v12 = vpop.eup %1889  ;;  %v1108_v56 = vmul.f32 0.044715, %v2603_v28  ;;  %v1065_v11 = vmul.f32 0.5, %v2587_v50 }
 0x27e   : > { %v992_v29 = vmul.f32 %v2360_v13, %v953_v17  ;;  %v1892_v47 = vpop.eup %1891  ;;  %v1695_v20 = vpack.c.bf16 %v1334_v62, %v1334_v62  ;;  %v1299_v33 = vadd.f32 1.0, %v1890_v12  ;;  %v1225_v4 = vmul.f32 0.7978846, %v1193_v43 }
 0x27f   : > { %v1894_v31 = vpop.eup %1893  ;;  %v1284_v59 = vadd.f32 1.0, %v1892_v47  ;;  %v1140_v15 = vmul.f32 %v1108_v56, %v2603_v28 }
 0x280   : > { %v2613_v46 = vadd.f32 %v2366_v21, %v992_v29  ;;  %v1896_v27 = vpop.eup %1895  ;;  %1495 = vst.msk [vmem:[%s2434_s5 + $0x6c] sm:$0xf] %vm1467_vm3, %v1695_v20  ;;  %v1331_v19 = vmul.f32 %v1299_v33, %v1075_v8  ;;  %1905 = vtanh.f32 %v1225_v4  ;;  %v956_v2 = vmul.f32 %v1894_v31, %v2309_v53 }
 0x281   : > { %v1898_v26 = vpop.eup %1897  ;;  %v1316_v39 = vmul.f32 %v1284_v59, %v1060_v58  ;;  %v1172_v14 = vmul.f32 %v1140_v15, %v2603_v28  ;;  %v969_v45 = vmul.f32 %v1896_v27, %v2331_v9 }
 0x282   : > { %v1095_v52 = vmul.f32 0.044715, %v2613_v46  ;;  %v1692_v37 = vpack.c.bf16 %v1331_v19, %v1331_v19  ;;  %v995_v7 = vmul.f32 %v2360_v13, %v956_v2  ;;  %v954_v23 = vmul.f32 %v1898_v26, %v2317_v54 }
 0x283   : > { %v1900_v36 = vpop.eup %1899  ;;  %v1677_v51 = vpack.c.bf16 %v1316_v39, %v1316_v39  ;;  %v1204_v48 = vadd.f32 %v1172_v14, %v2603_v28  ;;  %v1008_v49 = vmul.f32 %v2360_v13, %v969_v45  ;;  %v1076_v26 = vmul.f32 0.5, %v2603_v28 }
 0x284   : > { %v1127_v53 = vmul.f32 %v1095_v52, %v2613_v46  ;;  %v1902_v41 = vpop.eup %1901  ;;  %1492 = vst.msk [vmem:[%s2434_s5 + $0x60] sm:$0xf] %vm1467_vm3, %v1692_v37  ;;  %v2628_v38 = vadd.f32 %v2366_v21, %v995_v7  ;;  %v993_v57 = vmul.f32 %v2360_v13, %v954_v23  ;;  %v971_v9 = vmul.f32 %v1900_v36, %v2342_v60  ;;  %v1923_v21 = vld [vmem:[%s2711_s3] ss:$0 sm:$0xff] }
 0x285   : > { %1477 = vst.msk [vmem:[%s2434_s5 + $0x24] sm:$0xf] %vm1467_vm3, %v1677_v51  ;;  %v1236_v54 = vmul.f32 0.7978846, %v1204_v48  ;;  %v970_v1 = vmul.f32 %v1902_v41, %v2334_v10  ;;  %v2641_v18 = vadd.f32 %v1923_v21, %v1008_v49 }
 0x286   : > { %v1159_v3 = vmul.f32 %v1127_v53, %v2613_v46  ;;  %v1098_v44 = vmul.f32 0.044715, %v2628_v38  ;;  %v2643_v34 = vadd.f32 %v1923_v21, %v993_v57  ;;  %v1904_v13 = vpop.eup %1903  ;;  %v1010_v22 = vmul.f32 %v1924_v40, %v971_v9 }
 0x287   : > { %1907 = vtanh.f32 %v1236_v54  ;;  %v1009_v10 = vmul.f32 %v1924_v40, %v970_v1  ;;  %v1111_v5 = vmul.f32 0.044715, %v2641_v18  ;;  %v972_v32 = vmul.f32 %v1904_v13, %v2345_v63 }
 0x288   : > { %v1191_v60 = vadd.f32 %v1159_v3, %v2613_v46  ;;  %v1130_v24 = vmul.f32 %v1098_v44, %v2628_v38  ;;  %v1096_v35 = vmul.f32 0.044715, %v2643_v34  ;;  %v2652_v6 = vadd.f32 %v1923_v21, %v1010_v22 }
 0x289   : > { %v2654_v61 = vadd.f32 %v1923_v21, %v1009_v10  ;;  %v1143_v25 = vmul.f32 %v1111_v5, %v2641_v18  ;;  %v1011_v47 = vmul.f32 %v1924_v40, %v972_v32  ;;  %v1063_v53 = vmul.f32 0.5, %v2613_v46 }
 0x28a   : > { %v1223_v42 = vmul.f32 0.7978846, %v1191_v60  ;;  %v1906_v55 = vpop.eup %1905  ;;  %v1162_v30 = vmul.f32 %v1130_v24, %v2628_v38  ;;  %v1128_v0 = vmul.f32 %v1096_v35, %v2643_v34  ;;  %v1113_v43 = vmul.f32 0.044715, %v2652_v6 }
 0x28b   : > { %v1289_v16 = vadd.f32 1.0, %v1906_v55  ;;  %v1175_v62 = vmul.f32 %v1143_v25, %v2641_v18  ;;  %v1112_v29 = vmul.f32 0.044715, %v2654_v61  ;;  %v1050_v31 = vadd.f32 %v1923_v21, %v1011_v47 }
 0x28c   : > { %1909 = vtanh.f32 %v1223_v42  ;;  %v1194_v17 = vadd.f32 %v1162_v30, %v2628_v38  ;;  %v1160_v56 = vmul.f32 %v1128_v0, %v2643_v34  ;;  %v1145_v20 = vmul.f32 %v1113_v43, %v2652_v6 }
 0x28d   : > { %v1321_v12 = vmul.f32 %v1289_v16, %v1065_v11  ;;  %v1207_v50 = vadd.f32 %v1175_v62, %v2641_v18  ;;  %v1144_v4 = vmul.f32 %v1112_v29, %v2654_v61  ;;  %v1114_v2 = vmul.f32 0.044715, %v1050_v31 }
 0x28e   : > { %v1226_v63 = vmul.f32 0.7978846, %v1194_v17  ;;  %v1192_v33 = vadd.f32 %v1160_v56, %v2643_v34  ;;  %v1177_v59 = vmul.f32 %v1145_v20, %v2652_v6  ;;  %v1066_v3 = vmul.f32 0.5, %v2628_v38 }
 0x28f   : > { %v1682_v8 = vpack.c.bf16 %v1321_v12, %v1321_v12  ;;  %v1239_v58 = vmul.f32 0.7978846, %v1207_v50  ;;  %v1176_v19 = vmul.f32 %v1144_v4, %v2654_v61  ;;  %v1146_v37 = vmul.f32 %v1114_v2, %v1050_v31 }
 0x290   : > { %1911 = vtanh.f32 %v1226_v63  ;;  %v1224_v27 = vmul.f32 0.7978846, %v1192_v33  ;;  %v1209_v14 = vadd.f32 %v1177_v59, %v2652_v6  ;;  %v1079_v13 = vmul.f32 0.5, %v2641_v18 }
 0x291   : > { %v1908_v15 = vpop.eup %1907  ;;  %1482 = vst.msk [vmem:[%s2434_s5 + $0x38] sm:$0xf] %vm1467_vm3, %v1682_v8  ;;  %1913 = vtanh.f32 %v1239_v58  ;;  %v1208_v52 = vadd.f32 %v1176_v19, %v2654_v61  ;;  %v1178_v51 = vmul.f32 %v1146_v37, %v1050_v31  ;;  %v1064_v40 = vmul.f32 0.5, %v2643_v34 }
 0x292   : > { %v1300_v39 = vadd.f32 1.0, %v1908_v15  ;;  %1915 = vtanh.f32 %v1224_v27  ;;  %v1241_v45 = vmul.f32 0.7978846, %v1209_v14  ;;  %v1081_v55 = vmul.f32 0.5, %v2652_v6 }
 0x293   : > { %v1240_v36 = vmul.f32 0.7978846, %v1208_v52  ;;  %v1210_v28 = vadd.f32 %v1178_v51, %v1050_v31  ;;  %v1080_v25 = vmul.f32 0.5, %v2654_v61  ;;  %v1082_v62 = vmul.f32 0.5, %v1050_v31 }
 0x294   : > { %v1332_v7 = vmul.f32 %v1300_v39, %v1076_v26  ;;  %1917 = vtanh.f32 %v1241_v45 }
 0x295   : > { %1919 = vtanh.f32 %v1240_v36  ;;  %v1242_v57 = vmul.f32 0.7978846, %v1210_v28 }
 0x296   : > { %v1910_v23 = vpop.eup %1909  ;;  %v1693_v48 = vpack.c.bf16 %v1332_v7, %v1332_v7 }
 0x297   : > { %v1287_v41 = vadd.f32 1.0, %v1910_v23  ;;  %1921 = vtanh.f32 %v1242_v57 }
 0x298   : > { %1493 = vst.msk [vmem:[%s2434_s5 + $0x64] sm:$0xf] %vm1467_vm3, %v1693_v48 }
 0x299   : > { %v1319_v49 = vmul.f32 %v1287_v41, %v1063_v53 }
 0x29a   : > { %v1912_v9 = vpop.eup %1911 }
 0x29b   : > { %v1680_v54 = vpack.c.bf16 %v1319_v49, %v1319_v49  ;;  %v1290_v1 = vadd.f32 1.0, %v1912_v9  ;;  %v1914_v44 = vpop.eup %1913 }
 0x29c   : > { %v1916_v21 = vpop.eup %1915  ;;  %v1303_v60 = vadd.f32 1.0, %v1914_v44 }
 0x29d   : > { %1480 = vst.msk [vmem:[%s2434_s5 + $0x30] sm:$0xf] %vm1467_vm3, %v1680_v54  ;;  %v1322_v46 = vmul.f32 %v1290_v1, %v1066_v3  ;;  %v1288_v22 = vadd.f32 1.0, %v1916_v21 }
 0x29e   : > { %v1335_v24 = vmul.f32 %v1303_v60, %v1079_v13  ;;  %v1918_v5 = vpop.eup %1917 }
 0x29f   : > { %v1683_v10 = vpack.c.bf16 %v1322_v46, %v1322_v46  ;;  %v1320_v38 = vmul.f32 %v1288_v22, %v1064_v40  ;;  %v1920_v42 = vpop.eup %1919  ;;  %v1305_v30 = vadd.f32 1.0, %v1918_v5 }
 0x2a0   : > { %v1696_v35 = vpack.c.bf16 %v1335_v24, %v1335_v24  ;;  %v1304_v34 = vadd.f32 1.0, %v1920_v42 }
 0x2a1   : > { %1483 = vst.msk [vmem:[%s2434_s5 + $0x3c] sm:$0xf] %vm1467_vm3, %v1683_v10  ;;  %v1681_v18 = vpack.c.bf16 %v1320_v38, %v1320_v38  ;;  %v1337_v32 = vmul.f32 %v1305_v30, %v1081_v55  ;;  %v1922_v16 = vpop.eup %1921 }
 0x2a2   : > { %1496 = vst.msk [vmem:[%s2434_s5 + $0x70] sm:$0xf] %vm1467_vm3, %v1696_v35  ;;  %v1336_v11 = vmul.f32 %v1304_v34, %v1080_v25  ;;  %v1306_v43 = vadd.f32 1.0, %v1922_v16 }
 0x2a3   : > { %1481 = vst.msk [vmem:[%s2434_s5 + $0x34] sm:$0xf] %vm1467_vm3, %v1681_v18  ;;  %v1698_v0 = vpack.c.bf16 %v1337_v32, %v1337_v32 }
 0x2a4   : > { %v1697_v17 = vpack.c.bf16 %v1336_v11, %v1336_v11  ;;  %v1338_v6 = vmul.f32 %v1306_v43, %v1082_v62 }
 0x2a5   : > { %1498 = vst.msk [vmem:[%s2434_s5 + $0x78] sm:$0xf] %vm1467_vm3, %v1698_v0 }
 0x2a6   : > { %1497 = vst.msk [vmem:[%s2434_s5 + $0x74] sm:$0xf] %vm1467_vm3, %v1697_v17  ;;  %v1699_v12 = vpack.c.bf16 %v1338_v6, %v1338_v6 }
 0x2a8   : > { %1499 = vst.msk [vmem:[%s2434_s5 + $0x7c] sm:$0xf] %vm1467_vm3, %v1699_v12 }
 0x2a9 PF: > { %s14_s17 = sadd.s32 1, %s1947_s17   ;;  %s2713_s15 = smov %s1943_s16 }
 0x2aa   : > { %p11_p5 = scmp.ge.s32.totalorder %s14_s17, 4   ;;  %s2714_s16 = smov %s2716_s18 }
 0x2ac   :  { %13 = sbr.rel (!%p11_p5) target bundleno = 2 (0x2), region = 67 }

</bundles_post_ra>
